<compile_context>
chip_gen: v6e
topology: v6e:2x2x1
jax: 0.10.0
libtpu: 0.0.40
codegen_flags: <defaults>
</compile_context>

<pallas_src>
import jax
import jax.numpy as jnp
from jax.experimental import pallas as pl
from jax.experimental.pallas import tpu as pltpu

NUM_CLASSES = 10
PAD_CLASSES = 128     # lane-dense output width (unmasked vst)
NEG_BIG = -1e9        # bias on pad lanes -> exp() == 0 under softmax

_LAYER_SIZES = [(784, 512), (512, 256), (256, 128), (128, 64), (64, NUM_CLASSES)]


def _mlp_kernel(x_ref,
                w1_ref, b1_ref,
                w2_ref, b2_ref,
                w3_ref, b3_ref,
                w4_ref, b4_ref,
                w5_ref, b5_ref,
                o_ref):
    # Input arrives as fp32; cast to bf16 in-kernel (hidden under fc1 MXU work).
    h = x_ref[...].astype(jnp.bfloat16)                                  # (TILE_B, 784)

    h = jnp.dot(h, w1_ref[...], preferred_element_type=jnp.float32) + b1_ref[...]
    h = jnp.maximum(h, 0.0).astype(jnp.bfloat16)

    h = jnp.dot(h, w2_ref[...], preferred_element_type=jnp.float32) + b2_ref[...]
    h = jnp.maximum(h, 0.0).astype(jnp.bfloat16)

    h = jnp.dot(h, w3_ref[...], preferred_element_type=jnp.float32) + b3_ref[...]
    h = jnp.maximum(h, 0.0).astype(jnp.bfloat16)

    h = jnp.dot(h, w4_ref[...], preferred_element_type=jnp.float32) + b4_ref[...]
    h = jnp.maximum(h, 0.0).astype(jnp.bfloat16)

    # fc5 padded to 128 lanes; pad lanes carry bias = NEG_BIG -> exp == 0.
    logits = jnp.dot(h, w5_ref[...], preferred_element_type=jnp.float32) + b5_ref[...]

    # log_softmax over the class axis (stable, fp32, per-row)
    m = jnp.max(logits, axis=-1, keepdims=True)
    shifted = logits - m
    lse = jnp.log(jnp.sum(jnp.exp(shifted), axis=-1, keepdims=True))
    o_ref[...] = (shifted - lse).astype(o_ref.dtype)                    # (TILE_B, 128) fp32


def _resident(shape):
    """Full-array block pinned to block (0, 0) -> DMA'd once, resident in VMEM."""
    return pl.BlockSpec(shape, lambda i: (0, 0))


def _pick_tile_b(B):
    """Largest MXU-friendly batch tile that still leaves >=2 grid steps
    (so v7x's two TensorCores both get work), capped at 1024 rows (VMEM)."""
    for t in (1024, 512, 256, 128):
        if B >= 2 * t:
            return t
    # Tiny batch: single grid step, batch tile rounded up to a sublane multiple.
    return min(128, max(8, -(-B // 8) * 8))


def fashion_classifier_forward(x_nchw, params):
    """x_nchw: (B, 1, 28, 28) float32.  Returns (B, 10) log-probabilities."""
    B = x_nchw.shape[0]
    x = x_nchw.reshape(B, -1)                      # fp32; bf16 cast happens in-kernel

    tile_b = _pick_tile_b(B)
    grid_steps = pl.cdiv(B, tile_b)
    grid = (grid_steps,)
    # NOTE: no jnp.pad — the last grid step uses a Pallas partial block.  OOB
    # input rows may be garbage (even NaN/Inf) but no op mixes rows and OOB
    # output writes are dropped, so rows [:B] are exact.

    (w1, b1), (w2, b2), (w3, b3), (w4, b4), (w5, b5) = params

    # bf16 matmul weights; fp32 biases (added post-accumulation).
    w1b = w1.astype(jnp.bfloat16)
    w2b = w2.astype(jnp.bfloat16)
    w3b = w3.astype(jnp.bfloat16)
    w4b = w4.astype(jnp.bfloat16)
    # Pad fc5 to 128 output lanes: zero weights, NEG_BIG bias on the pad lanes.
    w5b = jnp.zeros((64, PAD_CLASSES), jnp.bfloat16).at[:, :NUM_CLASSES].set(
        w5.astype(jnp.bfloat16))
    b5p = jnp.full((1, PAD_CLASSES), NEG_BIG, jnp.float32).at[:, :NUM_CLASSES].set(b5)

    inputs = [x, w1b, b1, w2b, b2, w3b, b3, w4b, b4, w5b, b5p]

    in_specs = [
        pl.BlockSpec((tile_b, 784), lambda i: (i, 0)),    # activation tile (pipelined)
        _resident(w1b.shape), _resident(b1.shape),
        _resident(w2b.shape), _resident(b2.shape),
        _resident(w3b.shape), _resident(b3.shape),
        _resident(w4b.shape), _resident(b4.shape),
        _resident(w5b.shape), _resident(b5p.shape),
    ]
    out_spec = pl.BlockSpec((tile_b, PAD_CLASSES), lambda i: (i, 0))

    rows = grid_steps * tile_b
    flops_per_row = 2 * sum(fi * (PAD_CLASSES if fo == NUM_CLASSES else fo)
                            for fi, fo in _LAYER_SIZES)
    weight_bytes = 2 * sum(fi * (PAD_CLASSES if fo == NUM_CLASSES else fo)
                           for fi, fo in _LAYER_SIZES)
    bias_bytes = 4 * (512 + 256 + 128 + 64 + PAD_CLASSES)
    cost = pl.CostEstimate(
        flops=flops_per_row * rows,
        transcendentals=rows * (PAD_CLASSES + 1),
        bytes_accessed=rows * 784 * 4            # fp32 input read (cast in-kernel)
                       + weight_bytes + bias_bytes
                       + rows * PAD_CLASSES * 4,  # fp32 lane-dense output
    )

    cp_kwargs = dict(dimension_semantics=("parallel",))
    if tile_b >= 512:
        # v5e scoped-VMEM default is 16 MiB; big tiles need headroom.
        # (Fits within v7x's 64 MiB physical VMEM as well.)
        cp_kwargs["vmem_limit_bytes"] = 64 * 1024 * 1024

    out_padded = pl.pallas_call(
        _mlp_kernel,
        out_shape=jax.ShapeDtypeStruct((B, PAD_CLASSES), jnp.float32),
        grid=grid,
        in_specs=in_specs,
        out_specs=out_spec,
        compiler_params=pltpu.CompilerParams(**cp_kwargs),
        cost_estimate=cost,
    )(*inputs)

    return out_padded[:, :NUM_CLASSES]


def init_params(key):
    """Deterministic params. Weights stored as (in, out); biases as (1, out). fp32."""
    params = []
    for i, (fan_in, fan_out) in enumerate(_LAYER_SIZES):
        kw, kb, key = jax.random.split(jax.random.fold_in(key, i), 3)
        bound = 1.0 / jnp.sqrt(fan_in)  # torch nn.Linear default init range
        w = jax.random.uniform(kw, (fan_in, fan_out), jnp.float32, -bound, bound)
        b = jax.random.uniform(kb, (1, fan_out), jnp.float32, -bound, bound)
        params.append((w, b))
    return params


def reference_forward(x_nchw, params):
    """Pure-JAX reference with matching bf16 dot operands / fp32 accumulation."""
    x = x_nchw.reshape(x_nchw.shape[0], -1)

    def lin(h, w, b):
        return jnp.dot(h.astype(jnp.bfloat16), w.astype(jnp.bfloat16),
                       preferred_element_type=jnp.float32) + b

    (w1, b1), (w2, b2), (w3, b3), (w4, b4), (w5, b5) = params
    h = jnp.maximum(lin(x, w1, b1), 0.0)
    h = jnp.maximum(lin(h, w2, b2), 0.0)
    h = jnp.maximum(lin(h, w3, b3), 0.0)
    h = jnp.maximum(lin(h, w4, b4), 0.0)
    logits = lin(h, w5, b5)
    return jax.nn.log_softmax(logits, axis=-1)


if __name__ == "__main__":
    key = jax.random.PRNGKey(0)
    kx, kx2, kp = jax.random.split(key, 3)
    params = init_params(kp)

    # Small main test (batch=2) -- single partial block.
    B = 2
    x = jax.random.normal(kx, (B, 1, 28, 28), dtype=jnp.float32)
    out = jax.block_until_ready(fashion_classifier_forward(x, params))
    ref = reference_forward(x, params)
    assert out.shape == (B, NUM_CLASSES)
    assert jnp.allclose(out, ref, atol=2e-3, rtol=2e-3), "mismatch vs reference (B=2)"

    # Second test: multi-step grid + ragged partial last block (no wrapper pad).
    B2 = 130
    x2 = jax.random.normal(kx2, (B2, 1, 28, 28), dtype=jnp.float32)
    out2 = jax.block_until_ready(fashion_classifier_forward(x2, params))
    ref2 = reference_forward(x2, params)
    assert out2.shape == (B2, NUM_CLASSES)
    assert jnp.allclose(out2, ref2, atol=2e-3, rtol=2e-3), "mismatch vs reference (B=130)"

    print("KERNEL_OK")
</pallas_src>

<mosaic_0001>
module attributes {stable_mosaic.version = 11 : i64} {
  func.func @_mlp_kernel(%arg0: i32, %arg1: memref<8x784xf32, #tpu.memory_space<vmem>>, %arg2: memref<784x512xbf16, #tpu.memory_space<vmem>>, %arg3: memref<1x512xf32, #tpu.memory_space<vmem>>, %arg4: memref<512x256xbf16, #tpu.memory_space<vmem>>, %arg5: memref<1x256xf32, #tpu.memory_space<vmem>>, %arg6: memref<256x128xbf16, #tpu.memory_space<vmem>>, %arg7: memref<1x128xf32, #tpu.memory_space<vmem>>, %arg8: memref<128x64xbf16, #tpu.memory_space<vmem>>, %arg9: memref<1x64xf32, #tpu.memory_space<vmem>>, %arg10: memref<64x128xbf16, #tpu.memory_space<vmem>>, %arg11: memref<1x128xf32, #tpu.memory_space<vmem>>, %arg12: memref<8x128xf32, #tpu.memory_space<vmem>>) attributes {dimension_semantics = [#tpu.dimension_semantics<parallel>], iteration_bounds = array<i64: 1>, scalar_prefetch = 0 : i64, scratch_operands = 0 : i64, tpu.core_type = #tpu.core_type<tc>, window_params = [{transform_indices = @transform_0, window_bounds = array<i64: 8, 784>}, {pipeline_mode = #tpu.pipeline_mode<synchronous>, transform_indices = @transform_1, window_bounds = array<i64: 784, 512>}, {pipeline_mode = #tpu.pipeline_mode<synchronous>, transform_indices = @transform_2, window_bounds = array<i64: 1, 512>}, {pipeline_mode = #tpu.pipeline_mode<synchronous>, transform_indices = @transform_3, window_bounds = array<i64: 512, 256>}, {pipeline_mode = #tpu.pipeline_mode<synchronous>, transform_indices = @transform_4, window_bounds = array<i64: 1, 256>}, {pipeline_mode = #tpu.pipeline_mode<synchronous>, transform_indices = @transform_5, window_bounds = array<i64: 256, 128>}, {pipeline_mode = #tpu.pipeline_mode<synchronous>, transform_indices = @transform_6, window_bounds = array<i64: 1, 128>}, {pipeline_mode = #tpu.pipeline_mode<synchronous>, transform_indices = @transform_7, window_bounds = array<i64: 128, 64>}, {pipeline_mode = #tpu.pipeline_mode<synchronous>, transform_indices = @transform_8, window_bounds = array<i64: 1, 64>}, {pipeline_mode = #tpu.pipeline_mode<synchronous>, transform_indices = @transform_9, window_bounds = array<i64: 64, 128>}, {pipeline_mode = #tpu.pipeline_mode<synchronous>, transform_indices = @transform_10, window_bounds = array<i64: 1, 128>}, {transform_indices = @transform_11, window_bounds = array<i64: 8, 128>}]} {
    %c0 = arith.constant 0 : index
    %c0_0 = arith.constant 0 : index
    %0 = vector.load %arg1[%c0, %c0_0] : memref<8x784xf32, #tpu.memory_space<vmem>>, vector<8x784xf32>
    %1 = arith.truncf %0 : vector<8x784xf32> to vector<8x784xbf16>
    %c0_1 = arith.constant 0 : index
    %c0_2 = arith.constant 0 : index
    %2 = vector.load %arg2[%c0_1, %c0_2] : memref<784x512xbf16, #tpu.memory_space<vmem>>, vector<784x512xbf16>
    %cst = arith.constant dense<0.000000e+00> : vector<8x512xf32>
    %3 = tpu.matmul %1, %2, %cst {dimension_numbers = #tpu.dot_dimension_numbers<[1], [0], [0], [1], [0, 0, 1, 1], [], []>} : vector<8x784xbf16>, vector<784x512xbf16>, vector<8x512xf32> -> vector<8x512xf32>
    %c0_3 = arith.constant 0 : index
    %c0_4 = arith.constant 0 : index
    %4 = vector.load %arg3[%c0_3, %c0_4] : memref<1x512xf32, #tpu.memory_space<vmem>>, vector<1x512xf32>
    %5 = vector.broadcast %4 : vector<1x512xf32> to vector<8x512xf32>
    %6 = arith.addf %3, %5 : vector<8x512xf32>
    %cst_5 = arith.constant 0.000000e+00 : f32
    %7 = vector.broadcast %cst_5 : f32 to vector<8x512xf32>
    %8 = arith.maximumf %6, %7 : vector<8x512xf32>
    %9 = arith.truncf %8 : vector<8x512xf32> to vector<8x512xbf16>
    %c0_6 = arith.constant 0 : index
    %c0_7 = arith.constant 0 : index
    %10 = vector.load %arg4[%c0_6, %c0_7] : memref<512x256xbf16, #tpu.memory_space<vmem>>, vector<512x256xbf16>
    %cst_8 = arith.constant dense<0.000000e+00> : vector<8x256xf32>
    %11 = tpu.matmul %9, %10, %cst_8 {dimension_numbers = #tpu.dot_dimension_numbers<[1], [0], [0], [1], [0, 0, 1, 1], [], []>} : vector<8x512xbf16>, vector<512x256xbf16>, vector<8x256xf32> -> vector<8x256xf32>
    %c0_9 = arith.constant 0 : index
    %c0_10 = arith.constant 0 : index
    %12 = vector.load %arg5[%c0_9, %c0_10] : memref<1x256xf32, #tpu.memory_space<vmem>>, vector<1x256xf32>
    %13 = vector.broadcast %12 : vector<1x256xf32> to vector<8x256xf32>
    %14 = arith.addf %11, %13 : vector<8x256xf32>
    %cst_11 = arith.constant 0.000000e+00 : f32
    %15 = vector.broadcast %cst_11 : f32 to vector<8x256xf32>
    %16 = arith.maximumf %14, %15 : vector<8x256xf32>
    %17 = arith.truncf %16 : vector<8x256xf32> to vector<8x256xbf16>
    %c0_12 = arith.constant 0 : index
    %c0_13 = arith.constant 0 : index
    %18 = vector.load %arg6[%c0_12, %c0_13] : memref<256x128xbf16, #tpu.memory_space<vmem>>, vector<256x128xbf16>
    %cst_14 = arith.constant dense<0.000000e+00> : vector<8x128xf32>
    %19 = tpu.matmul %17, %18, %cst_14 {dimension_numbers = #tpu.dot_dimension_numbers<[1], [0], [0], [1], [0, 0, 1, 1], [], []>} : vector<8x256xbf16>, vector<256x128xbf16>, vector<8x128xf32> -> vector<8x128xf32>
    %c0_15 = arith.constant 0 : index
    %c0_16 = arith.constant 0 : index
    %20 = vector.load %arg7[%c0_15, %c0_16] : memref<1x128xf32, #tpu.memory_space<vmem>>, vector<1x128xf32>
    %21 = vector.broadcast %20 : vector<1x128xf32> to vector<8x128xf32>
    %22 = arith.addf %19, %21 : vector<8x128xf32>
    %cst_17 = arith.constant 0.000000e+00 : f32
    %23 = vector.broadcast %cst_17 : f32 to vector<8x128xf32>
    %24 = arith.maximumf %22, %23 : vector<8x128xf32>
    %25 = arith.truncf %24 : vector<8x128xf32> to vector<8x128xbf16>
    %c0_18 = arith.constant 0 : index
    %c0_19 = arith.constant 0 : index
    %26 = vector.load %arg8[%c0_18, %c0_19] : memref<128x64xbf16, #tpu.memory_space<vmem>>, vector<128x64xbf16>
    %cst_20 = arith.constant dense<0.000000e+00> : vector<8x64xf32>
    %27 = tpu.matmul %25, %26, %cst_20 {dimension_numbers = #tpu.dot_dimension_numbers<[1], [0], [0], [1], [0, 0, 1, 1], [], []>} : vector<8x128xbf16>, vector<128x64xbf16>, vector<8x64xf32> -> vector<8x64xf32>
    %c0_21 = arith.constant 0 : index
    %c0_22 = arith.constant 0 : index
    %28 = vector.load %arg9[%c0_21, %c0_22] : memref<1x64xf32, #tpu.memory_space<vmem>>, vector<1x64xf32>
    %29 = vector.broadcast %28 : vector<1x64xf32> to vector<8x64xf32>
    %30 = arith.addf %27, %29 : vector<8x64xf32>
    %cst_23 = arith.constant 0.000000e+00 : f32
    %31 = vector.broadcast %cst_23 : f32 to vector<8x64xf32>
    %32 = arith.maximumf %30, %31 : vector<8x64xf32>
    %33 = arith.truncf %32 : vector<8x64xf32> to vector<8x64xbf16>
    %c0_24 = arith.constant 0 : index
    %c0_25 = arith.constant 0 : index
    %34 = vector.load %arg10[%c0_24, %c0_25] : memref<64x128xbf16, #tpu.memory_space<vmem>>, vector<64x128xbf16>
    %cst_26 = arith.constant dense<0.000000e+00> : vector<8x128xf32>
    %35 = tpu.matmul %33, %34, %cst_26 {dimension_numbers = #tpu.dot_dimension_numbers<[1], [0], [0], [1], [0, 0, 1, 1], [], []>} : vector<8x64xbf16>, vector<64x128xbf16>, vector<8x128xf32> -> vector<8x128xf32>
    %c0_27 = arith.constant 0 : index
    %c0_28 = arith.constant 0 : index
    %36 = vector.load %arg11[%c0_27, %c0_28] : memref<1x128xf32, #tpu.memory_space<vmem>>, vector<1x128xf32>
    %37 = vector.broadcast %36 : vector<1x128xf32> to vector<8x128xf32>
    %38 = arith.addf %35, %37 : vector<8x128xf32>
    %cst_29 = arith.constant dense<0xFF800000> : vector<8xf32>
    %39 = vector.multi_reduction <maximumf>, %38, %cst_29 [1] : vector<8x128xf32> to vector<8xf32>
    %40 = vector.shape_cast %39 : vector<8xf32> to vector<8x1xf32>
    %41 = vector.broadcast %40 : vector<8x1xf32> to vector<8x128xf32>
    %42 = arith.subf %38, %41 : vector<8x128xf32>
    %43 = math.exp %42 : vector<8x128xf32>
    %cst_30 = arith.constant dense<0.000000e+00> : vector<8xf32>
    %44 = vector.multi_reduction <add>, %43, %cst_30 [1] : vector<8x128xf32> to vector<8xf32>
    %45 = vector.shape_cast %44 : vector<8xf32> to vector<8x1xf32>
    %46 = math.log %45 : vector<8x1xf32>
    %47 = vector.broadcast %46 : vector<8x1xf32> to vector<8x128xf32>
    %48 = arith.subf %42, %47 : vector<8x128xf32>
    %c0_31 = arith.constant 0 : index
    %c0_32 = arith.constant 0 : index
    %49 = vector.load %arg12[%c0_31, %c0_32] : memref<8x128xf32, #tpu.memory_space<vmem>>, vector<8x128xf32>
    tpu.vector_store %arg12[%c0_31, %c0_32], %48 {strides = array<i32>} : memref<8x128xf32, #tpu.memory_space<vmem>>, vector<8x128xf32>,
    return
  }
  func.func @transform_0(%arg0: i32) -> (i32, i32) {
    %c0_i32 = arith.constant 0 : i32
    %c0_i32_0 = arith.constant 0 : i32
    return %arg0, %c0_i32 : i32, i32
  }
  func.func @transform_1(%arg0: i32) -> (i32, i32) {
    %c0_i32 = arith.constant 0 : i32
    %c0_i32_0 = arith.constant 0 : i32
    %c0_i32_1 = arith.constant 0 : i32
    return %c0_i32, %c0_i32_0 : i32, i32
  }
  func.func @transform_2(%arg0: i32) -> (i32, i32) {
    %c0_i32 = arith.constant 0 : i32
    %c0_i32_0 = arith.constant 0 : i32
    %c0_i32_1 = arith.constant 0 : i32
    return %c0_i32, %c0_i32_0 : i32, i32
  }
  func.func @transform_3(%arg0: i32) -> (i32, i32) {
    %c0_i32 = arith.constant 0 : i32
    %c0_i32_0 = arith.constant 0 : i32
    %c0_i32_1 = arith.constant 0 : i32
    return %c0_i32, %c0_i32_0 : i32, i32
  }
  func.func @transform_4(%arg0: i32) -> (i32, i32) {
    %c0_i32 = arith.constant 0 : i32
    %c0_i32_0 = arith.constant 0 : i32
    %c0_i32_1 = arith.constant 0 : i32
    return %c0_i32, %c0_i32_0 : i32, i32
  }
  func.func @transform_5(%arg0: i32) -> (i32, i32) {
    %c0_i32 = arith.constant 0 : i32
    %c0_i32_0 = arith.constant 0 : i32
    %c0_i32_1 = arith.constant 0 : i32
    return %c0_i32, %c0_i32_0 : i32, i32
  }
  func.func @transform_6(%arg0: i32) -> (i32, i32) {
    %c0_i32 = arith.constant 0 : i32
    %c0_i32_0 = arith.constant 0 : i32
    %c0_i32_1 = arith.constant 0 : i32
    return %c0_i32, %c0_i32_0 : i32, i32
  }
  func.func @transform_7(%arg0: i32) -> (i32, i32) {
    %c0_i32 = arith.constant 0 : i32
    %c0_i32_0 = arith.constant 0 : i32
    %c0_i32_1 = arith.constant 0 : i32
    return %c0_i32, %c0_i32_0 : i32, i32
  }
  func.func @transform_8(%arg0: i32) -> (i32, i32) {
    %c0_i32 = arith.constant 0 : i32
    %c0_i32_0 = arith.constant 0 : i32
    %c0_i32_1 = arith.constant 0 : i32
    return %c0_i32, %c0_i32_0 : i32, i32
  }
  func.func @transform_9(%arg0: i32) -> (i32, i32) {
    %c0_i32 = arith.constant 0 : i32
    %c0_i32_0 = arith.constant 0 : i32
    %c0_i32_1 = arith.constant 0 : i32
    return %c0_i32, %c0_i32_0 : i32, i32
  }
  func.func @transform_10(%arg0: i32) -> (i32, i32) {
    %c0_i32 = arith.constant 0 : i32
    %c0_i32_0 = arith.constant 0 : i32
    %c0_i32_1 = arith.constant 0 : i32
    return %c0_i32, %c0_i32_0 : i32, i32
  }
  func.func @transform_11(%arg0: i32) -> (i32, i32) {
    %c0_i32 = arith.constant 0 : i32
    %c0_i32_0 = arith.constant 0 : i32
    return %arg0, %c0_i32 : i32, i32
  }
}

</mosaic_0001>

<bundles_post_ra>
// kernel: tpu_custom_call.1
= control target key start
LH: loop header
LB: loop body
LE: loop exit
PB: predicated region body
PF: predicated region fallthrough
CT: control target
= control target key end

     0   :  { %16 = vsyncpa [#allocation3], 0  ;;  %s3744_s0 = inlined_call_operand.vmem [shape: f32[2,784], index: 0, kind: input, shape index: {}]   ;;  %s3745_s1 = inlined_call_operand.hbm [shape: bf16[784,512], index: 1, kind: input, shape index: {}]   ;;  %s3746_s2 = inlined_call_operand.vmem [shape: f32[1,512], index: 2, kind: input, shape index: {}]   ;;  %s3747_s3 = inlined_call_operand.hbm [shape: bf16[512,256], index: 3, kind: input, shape index: {}]   ;;  %s3748_s4 = inlined_call_operand.vmem [shape: f32[1,256], index: 4, kind: input, shape index: {}]   ;;  %s3749_s5 = inlined_call_operand.hbm [shape: bf16[256,128], index: 5, kind: input, shape index: {}]   ;;  %s3750_s6 = inlined_call_operand.vmem [shape: f32[1,128], index: 6, kind: input, shape index: {}]   ;;  %s3751_s7 = inlined_call_operand.vmem [shape: bf16[128,64], index: 7, kind: input, shape index: {}]   ;;  %s3752_s8 = inlined_call_operand.vmem [shape: f32[1,64], index: 8, kind: input, shape index: {}]   ;;  %s3753_s9 = inlined_call_operand.vmem [shape: bf16[64,128], index: 9, kind: input, shape index: {}]   ;;  %s3754_s10 = inlined_call_operand.vmem [shape: f32[1,128], index: 10, kind: input, shape index: {}]   ;;  %s3755_s11 = inlined_call_operand.hbm [shape: f32[2,128], index: 11, kind: output, shape index: {}]  }
   0x1   :  { %17 = vsyncpa [#allocation6], 0 }
   0x2   :  { %18 = vsyncpa [#allocation4], 0  ;;  %s3502_s17 = smov [#allocation5]  }
   0x3   :  { %s40_s18 = sshll.u32 %s3502_s17, 4  ;;  %s41_s18 = int_to_ptr.vmem [resolvable:$true] %s40_s18 }
   0x4   :  { %s3424_s19 = scalar_lea.vmem %s41_s18, 8192  ;;  %p3429_p1 = scmp.lt.s32.totalorder %s41_s18, %s41_s18 }
   0x5   :  { %p3425_p0 = scmp.ne.s32.totalorder %s41_s18, %s3424_s19  ;;  %p3430_p2 = scmp.lt.s32.totalorder %s3424_s19, %s3424_s19 }
   0x7   :  { %p3431_p3 = por %p3430_p2, %p3429_p1 }
   0x9   :  { %p3432_p4 = pnand %p3431_p3, %p3425_p0 }
   0xb   :  { %3435 = shalt.err (!%p3432_p4)
}
   0xc   :  { %s3503_s20 = smov 128   ;;  %s3504_s21 = smov 8  }
   0xd   :  { %46 = dma.hbm_to_vmem [thread:$0]  %s3747_s3, 8192, %s41_s18, [#allocation6], %s3503_s20, %s3503_s20, %s3504_s21  }
   0xe   :  { %s3505_s24 = smov [#allocation2]  }
   0xf   :  { %s26_s25 = sshll.u32 %s3505_s24, 4  ;;  %s27_s25 = int_to_ptr.vmem [resolvable:$true] %s26_s25 }
  0x10   :  { %s3444_s26 = scalar_lea.vmem %s27_s25, 25088  ;;  %p3449_p6 = scmp.lt.s32.totalorder %s27_s25, %s27_s25 }
  0x11   :  { %p3445_p5 = scmp.ne.s32.totalorder %s27_s25, %s3444_s26  ;;  %p3450_p7 = scmp.lt.s32.totalorder %s3444_s26, %s3444_s26 }
  0x13   :  { %p3451_p8 = por %p3450_p7, %p3449_p6 }
  0x15   :  { %p3452_p9 = pnand %p3451_p8, %p3445_p5 }
  0x17   :  { %3455 = shalt.err (!%p3452_p9)
}
  0x18   :  { %s3506_s27 = smov 256   ;;  %s3507_s28 = smov 16  }
  0x19   :  { %32 = dma.hbm_to_vmem [thread:$0]  %s3745_s1, 25088, %s27_s25, [#allocation3], %s3506_s27, %s3506_s27, %s3507_s28  }
  0x1a   :  { %s3508_s12 = smov [#allocation7]  }
  0x1b   :  { %s54_s13 = sshll.u32 %s3508_s12, 4  ;;  %s55_s13 = int_to_ptr.vmem [resolvable:$true] %s54_s13 }
  0x1c   :  { %s3464_s3 = scalar_lea.vmem %s55_s13, 2048  ;;  %p3469_p11 = scmp.lt.s32.totalorder %s55_s13, %s55_s13 }
  0x1d   :  { %p3465_p10 = scmp.ne.s32.totalorder %s55_s13, %s3464_s3  ;;  %p3470_p12 = scmp.lt.s32.totalorder %s3464_s3, %s3464_s3 }
  0x1f   :  { %p3471_p13 = por %p3470_p12, %p3469_p11 }
  0x21   :  { %p3472_p0 = pnand %p3471_p13, %p3465_p10 }
  0x23   :  { %3475 = shalt.err (!%p3472_p0)
}
  0x24   :  { %s3509_s14 = smov 64   ;;  %s3510_s15 = smov 4  }
  0x25   :  { %60 = dma.hbm_to_vmem [thread:$0]  %s3749_s5, 2048, %s55_s13, [#allocation6], %s3509_s14, %s3509_s14, %s3510_s15  }
  0x26   :  { %3496 = dma.done.wait [#allocation3], 25088  }
  0x27   :  { %3497 = vsyncadd [#allocation3], 4294942208 }
  0x28   :  { %3498 = dma.done.wait [#allocation6], 10240  }
  0x29   :  { %3499 = vsyncadd [#allocation6], 4294957056  ;;  %v2982_v0 = vld [vmem:[#allocation2 + $0xe4] ss:$16 sps:$4 sm:$0xff]   ;;  %v2986_v2 = vld [vmem:[#allocation2 + $0xe0] ss:$16 sps:$4 sm:$0xff]   ;;  %v104_v40 = vlaneseq }
  0x2a   :  { %v2984_v1 = vld [vmem:[#allocation2 + $0x2e4] ss:$16 sps:$4 sm:$0xff]   ;;  %1384 = vmatprep.subr.bf16.mxu0 %v2982_v0  ;;  %v2987_v3 = vld [vmem:[#allocation2 + $0x2e0] ss:$16 sps:$4 sm:$0xff]   ;;  %v3511_v38 = vmov 1983009808  }
  0x2b   :  { %1425 = vmatprep.subr.bf16.mxu1 %v2984_v1  ;;  %v2988_v4 = vld [vmem:[#allocation2 + $0xc4] ss:$16 sps:$4 sm:$0xff]   ;;  %1385 = vmatpush1.bf16.msra.mxu0 %v2986_v2  ;;  %v2992_v6 = vld [vmem:[#allocation2 + $0xc0] ss:$16 sps:$4 sm:$0xff]   ;;  %v102_v39 = vunpack.c.l.s4 %v3511_v38  ;;  %v3587_v46 = vshrl.u32 %v104_v40, 7  ;;  %vm1380_vm0 = vcmask 130048  }
  0x2c   :  { %1426 = vmatpush1.bf16.msra.mxu1 %v2987_v3  ;;  %v2990_v5 = vld [vmem:[#allocation2 + $0x2c4] ss:$16 sps:$4 sm:$0xff]   ;;  %1386 = vmatprep.subr.bf16.mxu0 %v2988_v4  ;;  %v2993_v7 = vld [vmem:[#allocation2 + $0x2c0] ss:$16 sps:$4 sm:$0xff]   ;;  %v3080_v57 = vld [vmem:[%s3744_s0 + $0x1c] ss:$14 sps:$4 sm:$0xff]  }
  0x2d   :  { %1427 = vmatprep.subr.bf16.mxu1 %v2990_v5  ;;  %v2994_v8 = vld [vmem:[#allocation2 + $0xa4] ss:$16 sps:$4 sm:$0xff]   ;;  %v2998_v10 = vld [vmem:[#allocation2 + $0xa0] ss:$16 sps:$4 sm:$0xff]   ;;  %v103_v45 = vunpack.c.0.s8 %v102_v39  ;;  %v3105_v39 = vld [vmem:[#allocation2 + $0xcc] ss:$16 sps:$4 sm:$0xff]  }
  0x2e   :  { %v2996_v9 = vld [vmem:[#allocation2 + $0x2a4] ss:$16 sps:$4 sm:$0xff]   ;;  %v2999_v11 = vld [vmem:[#allocation2 + $0x2a0] ss:$16 sps:$4 sm:$0xff]   ;;  %vm3514_vm1 = vmmov 0   ;;  %vm2531_vm2 = vcmask 523264  }
  0x2f   :  { %1387 = vmatpush1.bf16.msra.mxu0 %v2992_v6  ;;  %v3000_v12 = vld [vmem:[#allocation2 + $0x84] ss:$16 sps:$4 sm:$0xff]   ;;  %v3004_v14 = vld [vmem:[#allocation2 + $0x80] ss:$16 sps:$4 sm:$0xff]   ;;  %v3590_v53 = vsub.s32 %v103_v45, %v3587_v46  ;;  %v3109_v45 = vld [vmem:[#allocation2 + $0xa8] ss:$16 sps:$4 sm:$0xff]  }
  0x30   :  { %1428 = vmatpush1.bf16.msra.mxu1 %v2993_v7  ;;  %1388 = vmatprep.subr.bf16.mxu0 %v2994_v8  ;;  %v3002_v13 = vld [vmem:[#allocation2 + $0x284] ss:$16 sps:$4 sm:$0xff]   ;;  %v3005_v15 = vld [vmem:[#allocation2 + $0x280] ss:$16 sps:$4 sm:$0xff]  }
  0x31   :  { %1429 = vmatprep.subr.bf16.mxu1 %v2996_v9  ;;  %v3006_v16 = vld [vmem:[#allocation2 + $0x64] ss:$16 sps:$4 sm:$0xff]   ;;  %v3010_v18 = vld [vmem:[#allocation2 + $0x60] ss:$16 sps:$4 sm:$0xff]   ;;  %v121_v61 = vrot.slane %v3080_v57, %v3590_v53  ;;  %v3129_v57 = vld [vmem:[#allocation2 + $0x4c] ss:$16 sps:$4 sm:$0xff]  }
  0x32   :  { %v3008_v17 = vld [vmem:[#allocation2 + $0x264] ss:$16 sps:$4 sm:$0xff]   ;;  %v3011_v19 = vld [vmem:[#allocation2 + $0x260] ss:$16 sps:$4 sm:$0xff]  }
  0x33   :  { %1389 = vmatpush1.bf16.msra.mxu0 %v2998_v10  ;;  %v3012_v20 = vld [vmem:[#allocation2 + $0x44] ss:$16 sps:$4 sm:$0xff]   ;;  %v3016_v22 = vld [vmem:[#allocation2 + $0x40] ss:$16 sps:$4 sm:$0xff]  }
  0x34   :  { %1430 = vmatpush1.bf16.msra.mxu1 %v2999_v11  ;;  %1390 = vmatprep.subr.bf16.mxu0 %v3000_v12  ;;  %v3014_v21 = vld [vmem:[#allocation2 + $0x244] ss:$16 sps:$4 sm:$0xff]   ;;  %v3017_v23 = vld [vmem:[#allocation2 + $0x240] ss:$16 sps:$4 sm:$0xff]  }
  0x35   :  { %1431 = vmatprep.subr.bf16.mxu1 %v3002_v13  ;;  %v3018_v24 = vld [vmem:[#allocation2 + $0x24] ss:$16 sps:$4 sm:$0xff]   ;;  %v3022_v26 = vld [vmem:[#allocation2 + $0x20] ss:$16 sps:$4 sm:$0xff]  }
  0x36   :  { %v3020_v25 = vld [vmem:[#allocation2 + $0x224] ss:$16 sps:$4 sm:$0xff]   ;;  %v3023_v27 = vld [vmem:[#allocation2 + $0x220] ss:$16 sps:$4 sm:$0xff]  }
  0x37   :  { %1391 = vmatpush1.bf16.msra.mxu0 %v3004_v14  ;;  %v3024_v28 = vld [vmem:[#allocation2 + $0x4] ss:$16 sps:$4 sm:$0xff]   ;;  %v3028_v30 = vld [vmem:[#allocation2] ss:$16 sps:$4 sm:$0xff]  }
  0x38   :  { %1432 = vmatpush1.bf16.msra.mxu1 %v3005_v15  ;;  %1392 = vmatprep.subr.bf16.mxu0 %v3006_v16  ;;  %v3026_v29 = vld [vmem:[#allocation2 + $0x204] ss:$16 sps:$4 sm:$0xff]   ;;  %v3029_v31 = vld [vmem:[#allocation2 + $0x200] ss:$16 sps:$4 sm:$0xff]  }
  0x39   :  { %1433 = vmatprep.subr.bf16.mxu1 %v3008_v17  ;;  %v3030_v32 = vld [vmem:[#allocation2 + $0x1e4] ss:$16 sps:$4 sm:$0xff]   ;;  %v3034_v34 = vld [vmem:[#allocation2 + $0x1e0] ss:$16 sps:$4 sm:$0xff]  }
  0x3a   :  { %v3032_v33 = vld [vmem:[#allocation2 + $0x3e4] ss:$16 sps:$4 sm:$0xff]   ;;  %v3035_v35 = vld [vmem:[#allocation2 + $0x3e0] ss:$16 sps:$4 sm:$0xff]  }
  0x3b   :  { %1393 = vmatpush1.bf16.msra.mxu0 %v3010_v18  ;;  %v3036_v36 = vld [vmem:[#allocation2 + $0x1c4] ss:$16 sps:$4 sm:$0xff]   ;;  %v3040_v41 = vld [vmem:[#allocation2 + $0x1c0] ss:$16 sps:$4 sm:$0xff]  }
  0x3c   :  { %1434 = vmatpush1.bf16.msra.mxu1 %v3011_v19  ;;  %1394 = vmatprep.subr.bf16.mxu0 %v3012_v20  ;;  %v3038_v37 = vld [vmem:[#allocation2 + $0x3c4] ss:$16 sps:$4 sm:$0xff]   ;;  %v3041_v42 = vld [vmem:[#allocation2 + $0x3c0] ss:$16 sps:$4 sm:$0xff]  }
  0x3d   :  { %1435 = vmatprep.subr.bf16.mxu1 %v3014_v21  ;;  %v3042_v43 = vld [vmem:[#allocation2 + $0x1a4] ss:$16 sps:$4 sm:$0xff]   ;;  %v3046_v47 = vld [vmem:[#allocation2 + $0x1a0] ss:$16 sps:$4 sm:$0xff]  }
  0x3e   :  { %v3044_v44 = vld [vmem:[#allocation2 + $0x3a4] ss:$16 sps:$4 sm:$0xff]   ;;  %v3047_v48 = vld [vmem:[#allocation2 + $0x3a0] ss:$16 sps:$4 sm:$0xff]  }
  0x3f   :  { %1395 = vmatpush1.bf16.msra.mxu0 %v3016_v22  ;;  %v3048_v49 = vld [vmem:[#allocation2 + $0x184] ss:$16 sps:$4 sm:$0xff]   ;;  %v3052_v51 = vld [vmem:[#allocation2 + $0x180] ss:$16 sps:$4 sm:$0xff]  }
  0x40   :  { %1436 = vmatpush1.bf16.msra.mxu1 %v3017_v23  ;;  %1396 = vmatprep.subr.bf16.mxu0 %v3018_v24  ;;  %v3050_v50 = vld [vmem:[#allocation2 + $0x384] ss:$16 sps:$4 sm:$0xff]   ;;  %v3053_v52 = vld [vmem:[#allocation2 + $0x380] ss:$16 sps:$4 sm:$0xff]  }
  0x41   :  { %1437 = vmatprep.subr.bf16.mxu1 %v3020_v25  ;;  %v3054_v54 = vld [vmem:[#allocation2 + $0x164] ss:$16 sps:$4 sm:$0xff]   ;;  %v3078_v56 = vld [vmem:[%s3744_s0] ss:$14 sps:$4 sm:$0xff]  }
  0x42   :  { %v3056_v55 = vld [vmem:[#allocation2 + $0x364] ss:$16 sps:$4 sm:$0xff]   ;;  %v3083_v59 = vld [vmem:[%s3744_s0 + $0x20] ss:$14 sps:$4 sm:$0xff]   ;;  %v107_v60 = vrot.slane %v3078_v56, %v3590_v53 }
  0x43   :  { %1397 = vmatpush1.bf16.msra.mxu0 %v3022_v26  ;;  %v3082_v58 = vld [vmem:[%s3744_s0 + $0x4] ss:$14 sps:$4 sm:$0xff]   ;;  %v128_v1 = vrot.slane %v3083_v59, %v3590_v53  ;;  %v3099_v16 = vld [vmem:[%s3744_s0 + $0xc] ss:$14 sps:$4 sm:$0x33]  }
  0x44   :  { %1438 = vmatpush1.bf16.msra.mxu1 %v3023_v27  ;;  %1398 = vmatprep.subr.bf16.mxu0 %v3024_v28  ;;  %v114_v62 = vrot.slane %v3082_v58, %v3590_v53  ;;  %v3058_v63 = vld [vmem:[#allocation2 + $0x160] ss:$16 sps:$4 sm:$0xff]   ;;  %v3060_v2 = vld [vmem:[#allocation2 + $0x144] ss:$16 sps:$4 sm:$0xff]   ;;  %v130_v3 = vcombine.high %v107_v60, %v121_v61  ;;  %v129_v17 = vcombine.low %v107_v60, %v121_v61 }
  0x45   :  { %1439 = vmatprep.subr.bf16.mxu1 %v3026_v29  ;;  %v3059_v0 = vld [vmem:[#allocation2 + $0x360] ss:$16 sps:$4 sm:$0xff]   ;;  %v3062_v4 = vld [vmem:[#allocation2 + $0x344] ss:$16 sps:$4 sm:$0xff]   ;;  %v150_v26 = vrot.slane %v3099_v16, %v3590_v53 }
  0x46   :  { %v132_v5 = vcombine.high %v114_v62, %v128_v1  ;;  %v3064_v6 = vld [vmem:[#allocation2 + $0x140] ss:$16 sps:$4 sm:$0xff]   ;;  %v3608_v7 = vpack.c.bf16 %v130_v3, %v130_v3  ;;  %v3066_v9 = vld [vmem:[#allocation2 + $0x124] ss:$16 sps:$4 sm:$0xff]   ;;  %v131_v18 = vcombine.low %v114_v62, %v128_v1  ;;  %v3620_v24 = vpack.c.bf16 %v129_v17, %v129_v17  ;;  %v3127_v62 = vld [vmem:[#allocation2 + $0x48] ss:$16 sps:$4 sm:$0xff]  }
  0x47   :  { %1399 = vmatpush1.bf16.msra.mxu0 %v3028_v30  ;;  %v3065_v8 = vld [vmem:[#allocation2 + $0x340] ss:$16 sps:$4 sm:$0xff]   ;;  %v3068_v11 = vld [vmem:[#allocation2 + $0x324] ss:$16 sps:$4 sm:$0xff]   ;;  %v3135_v1 = vld [vmem:[#allocation2 + $0x2c] ss:$16 sps:$4 sm:$0xff]  }
  0x48   :  { %1440 = vmatpush1.bf16.msra.mxu1 %v3029_v31  ;;  %1400 = vmatprep.subr.bf16.mxu0 %v3030_v32  ;;  %v3610_v10 = vpack.c.bf16 %v132_v5, %v132_v5  ;;  %v3070_v12 = vld [vmem:[#allocation2 + $0x120] ss:$16 sps:$4 sm:$0xff]   ;;  %v3072_v14 = vld [vmem:[#allocation2 + $0x104] ss:$16 sps:$4 sm:$0xff]   ;;  %v3622_v25 = vpack.c.bf16 %v131_v18, %v131_v18  ;;  %v3095_v31 = vld [vmem:[#allocation2 + $0xec] ss:$16 sps:$4 sm:$0xff]  }
  0x49   :  { %1441 = vmatprep.subr.bf16.mxu1 %v3032_v33  ;;  %1416 = vmatprep.mubr.bf16.mxu0 %v3608_v7  ;;  %v3071_v13 = vld [vmem:[#allocation2 + $0x320] ss:$16 sps:$4 sm:$0xff]   ;;  %v3074_v15 = vld [vmem:[#allocation2 + $0x304] ss:$16 sps:$4 sm:$0xff]   ;;  %v3151_v17 = vld [vmem:[#allocation2 + $0x1c8] ss:$16 sps:$4 sm:$0xff]  }
  0x4a   :  { %1457 = vmatprep.mubr.bf16.mxu1 %v3610_v10  ;;  %v3101_v19 = vld [vmem:[%s3744_s0 + $0x28] ss:$14 sps:$4 sm:$0x33]   ;;  %v3076_v20 = vld [vmem:[#allocation2 + $0x100] ss:$16 sps:$4 sm:$0xff]  }
  0x4b   :  { %1401 = vmatpush2.bf16.msra.mxu0 %v3034_v34  ;;  %v3077_v21 = vld [vmem:[#allocation2 + $0x300] ss:$16 sps:$4 sm:$0xff]   ;;  %v3086_v22 = vld [vmem:[#allocation2 + $0x4e4] ss:$16 sps:$4 sm:$0xff]   ;;  %v164_v27 = vrot.slane %v3101_v19, %v3590_v53  ;;  %v3512_v34 = vmov 0  }
  0x4c   :  { %1442 = vmatpush2.bf16.msra.mxu1 %v3035_v35  ;;  %1402 = vmatprep.subr.bf16.mxu0 %v3036_v36  ;;  %v3089_v23 = vld [vmem:[#allocation2 + $0x604] ss:$16 sps:$4 sm:$0xff]   ;;  %v3084_v28 = vld [vmem:[#allocation2 + $0x4e0] ss:$16 sps:$4 sm:$0xff]   ;;  %v3159_v19 = vld [vmem:[#allocation2 + $0x1ac] ss:$16 sps:$4 sm:$0xff]  }
  0x4d   :  { %1443 = vmatprep.subr.bf16.mxu1 %v3038_v37  ;;  %v3087_v29 = vld [vmem:[#allocation2 + $0x600] ss:$16 sps:$4 sm:$0xff]   ;;  %v3092_v30 = vld [vmem:[#allocation2 + $0x4c4] ss:$16 sps:$4 sm:$0xff]   ;;  %v167_v32 = vcombine.low %v150_v26, %v164_v27  ;;  %v3093_v37 = vld [vmem:[#allocation2 + $0xe8] ss:$16 sps:$4 sm:$0xff]  }
  0x4e   :  { %v3090_v33 = vld [vmem:[#allocation2 + $0x4c0] ss:$16 sps:$4 sm:$0xff]   ;;  %v3098_v35 = vld [vmem:[#allocation2 + $0x4a4] ss:$16 sps:$4 sm:$0xff]   ;;  %v3163_v27 = vld [vmem:[#allocation2 + $0x188] ss:$16 sps:$4 sm:$0xff]  }
  0x4f   :  { %1403 = vmatpush2.bf16.msra.mxu0 %v3040_v41  ;;  %v3629_v36 = vpack.c.bf16 %v167_v32, %v167_v32  ;;  %v3096_v38 = vld [vmem:[#allocation2 + $0x4a0] ss:$16 sps:$4 sm:$0xff]   ;;  %v3108_v40 = vld [vmem:[#allocation2 + $0x484] ss:$16 sps:$4 sm:$0xff]   ;;  %v3103_v41 = vld [vmem:[#allocation2 + $0xc8] ss:$16 sps:$4 sm:$0xff]  }
  0x50   :  { %1444 = vmatpush2.bf16.msra.mxu1 %v3041_v42  ;;  %1404 = vmatprep.subr.bf16.mxu0 %v3042_v43  ;;  %v3106_v42 = vld [vmem:[#allocation2 + $0x480] ss:$16 sps:$4 sm:$0xff]   ;;  %v3111_v43 = vld [vmem:[#allocation2 + $0xac] ss:$16 sps:$4 sm:$0xff]   ;;  %v3132_v58 = vld [vmem:[#allocation2 + $0x404] ss:$16 sps:$4 sm:$0xff]  }
  0x51   :  { %1445 = vmatprep.subr.bf16.mxu1 %v3044_v44  ;;  %v3114_v44 = vld [vmem:[#allocation2 + $0x464] ss:$16 sps:$4 sm:$0xff]   ;;  %v3124_v56 = vld [vmem:[#allocation2 + $0x420] ss:$16 sps:$4 sm:$0xff]  }
  0x52   :  { %v3181_v59 = vld [vmem:[%s3744_s0 + $0x8] ss:$14 sps:$4 sm:$0xff]   ;;  %v3182_v60 = vld [vmem:[%s3744_s0 + $0x24] ss:$14 sps:$4 sm:$0xff]  }
  0x53   :  { %1405 = vmatpush2.bf16.msra.mxu0 %v3046_v47  ;;  %v3112_v47 = vld [vmem:[#allocation2 + $0x460] ss:$16 sps:$4 sm:$0xff]   ;;  %v3641_v61 = vrot.slane %v3181_v59, %v3590_v53  ;;  %v3156_v16 = vld [vmem:[#allocation2 + $0x584] ss:$16 sps:$4 sm:$0xff]   ;;  %v3209_v59 = vld [vmem:[#allocation2 + $0x4ac] ss:$16 sps:$4 sm:$0xff]  }
  0x54   :  { %1446 = vmatpush2.bf16.msra.mxu1 %v3047_v48  ;;  %1406 = vmatprep.subr.bf16.mxu0 %v3048_v49  ;;  %v3117_v48 = vld [vmem:[#allocation2 + $0x8c] ss:$16 sps:$4 sm:$0xff]   ;;  %v3120_v49 = vld [vmem:[#allocation2 + $0x444] ss:$16 sps:$4 sm:$0xff]   ;;  %v3136_v5 = vld [vmem:[#allocation2 + $0x5e0] ss:$16 sps:$4 sm:$0xff]  }
  0x55   :  { %1447 = vmatprep.subr.bf16.mxu1 %v3050_v50  ;;  %v3115_v50 = vld [vmem:[#allocation2 + $0x88] ss:$16 sps:$4 sm:$0xff]   ;;  %v3154_v18 = vld [vmem:[#allocation2 + $0x580] ss:$16 sps:$4 sm:$0xff]   ;;  %v3168_v26 = vld [vmem:[#allocation2 + $0x544] ss:$16 sps:$4 sm:$0xff]  }
  0x56   :  { %v3172_v32 = vld [vmem:[#allocation2 + $0x520] ss:$16 sps:$4 sm:$0xff]  }
  0x57   :  { %1407 = vmatpush2.bf16.msra.mxu0 %v3052_v51  ;;  %v3118_v51 = vld [vmem:[#allocation2 + $0x440] ss:$16 sps:$4 sm:$0xff]  }
  0x58   :  { %1448 = vmatpush2.bf16.msra.mxu1 %v3053_v52  ;;  %1408 = vmatprep.subr.bf16.mxu0 %v3054_v54  ;;  %v3123_v52 = vld [vmem:[#allocation2 + $0x6c] ss:$16 sps:$4 sm:$0xff]   ;;  %v3126_v54 = vld [vmem:[#allocation2 + $0x424] ss:$16 sps:$4 sm:$0xff]  }
  0x59   :  { %1449 = vmatprep.subr.bf16.mxu1 %v3056_v55  ;;  %v3121_v55 = vld [vmem:[#allocation2 + $0x68] ss:$16 sps:$4 sm:$0xff]  }
  0x5b   :  { %1409 = vmatpush2.bf16.msra.mxu0 %v3058_v63  ;;  %v3130_v63 = vld [vmem:[#allocation2 + $0x400] ss:$16 sps:$4 sm:$0xff]  }
  0x5c   :  { %1450 = vmatpush2.bf16.msra.mxu1 %v3059_v0  ;;  %1410 = vmatprep.subr.bf16.mxu0 %v3060_v2  ;;  %v3644_v0 = vrot.slane %v3182_v60, %v3590_v53  ;;  %v3138_v2 = vld [vmem:[#allocation2 + $0x5e4] ss:$16 sps:$4 sm:$0xff]   ;;  %v3212_v60 = vld [vmem:[#allocation2 + $0x26c] ss:$16 sps:$4 sm:$0xff]  }
  0x5d   :  { %1451 = vmatprep.subr.bf16.mxu1 %v3062_v4  ;;  %v3133_v4 = vld [vmem:[#allocation2 + $0x28] ss:$16 sps:$4 sm:$0xff]   ;;  %v3144_v53 = vld [vmem:[#allocation2 + $0x5c4] ss:$16 sps:$4 sm:$0xff]  }
  0x5e   :  { %v166_v3 = vcombine.high %v3641_v61, %v3644_v0 }
  0x5f   :  { %1411 = vmatpush2.bf16.msra.mxu0 %v3064_v6 }
  0x60   :  { %1452 = vmatpush2.bf16.msra.mxu1 %v3065_v8  ;;  %1412 = vmatprep.subr.bf16.mxu0 %v3066_v9  ;;  %v3648_v6 = vpack.c.bf16 %v166_v3, %v166_v3  ;;  %v3139_v8 = vld [vmem:[#allocation2 + $0x8] ss:$16 sps:$4 sm:$0xff]   ;;  %v3142_v9 = vld [vmem:[#allocation2 + $0x5c0] ss:$16 sps:$4 sm:$0xff]  }
  0x61   :  { %1453 = vmatprep.subr.bf16.mxu1 %v3068_v11  ;;  %v3147_v11 = vld [vmem:[#allocation2 + $0x1ec] ss:$16 sps:$4 sm:$0xff]   ;;  %v3219_v3 = vld [vmem:[#allocation2 + $0x468] ss:$16 sps:$4 sm:$0xff]  }
  0x63   :  { %1413 = vmatpush2.bf16.msra.mxu0 %v3070_v12  ;;  %v3150_v12 = vld [vmem:[#allocation2 + $0x5a4] ss:$16 sps:$4 sm:$0xff]  }
  0x64   :  { %1454 = vmatpush2.bf16.msra.mxu1 %v3071_v13  ;;  %1414 = vmatprep.subr.bf16.mxu0 %v3072_v14  ;;  %v3145_v13 = vld [vmem:[#allocation2 + $0x1e8] ss:$16 sps:$4 sm:$0xff]   ;;  %v3148_v14 = vld [vmem:[#allocation2 + $0x5a0] ss:$16 sps:$4 sm:$0xff]  }
  0x65   :  { %1455 = vmatprep.subr.bf16.mxu1 %v3074_v15  ;;  %v3153_v15 = vld [vmem:[#allocation2 + $0x1cc] ss:$16 sps:$4 sm:$0xff]  }
  0x67   :  { %1415 = vmatpush2.bf16.msra.mxu0 %v3076_v20  ;;  %v3162_v20 = vld [vmem:[#allocation2 + $0x564] ss:$16 sps:$4 sm:$0xff]  }
  0x68   :  { %1456 = vmatpush2.bf16.msra.mxu1 %v3077_v21  ;;  %1466 = vmatprep.subr.bf16.mxu0 %v3086_v22  ;;  %v3157_v21 = vld [vmem:[#allocation2 + $0x1a8] ss:$16 sps:$4 sm:$0xff]   ;;  %v3160_v22 = vld [vmem:[#allocation2 + $0x560] ss:$16 sps:$4 sm:$0xff]  }
  0x69   :  { %1521 = vmatprep.subr.bf16.mxu1 %v3089_v23  ;;  %v3165_v23 = vld [vmem:[#allocation2 + $0x18c] ss:$16 sps:$4 sm:$0xff]  }
  0x6a   :  { %1417 = vmatmul.mubr.bf16.vlgmr.msra.gmra.mxu0 %v3620_v24 }
  0x6b   :  { %1458 = vmatmul.mubr.bf16.vlgmr.msra.gmra.mxu1 %v3622_v25  ;;  %1467 = vmatpush1.bf16.msra.mxu0 %v3084_v28  ;;  %v3166_v28 = vld [vmem:[#allocation2 + $0x540] ss:$16 sps:$4 sm:$0xff]  }
  0x6c   :  { %1522 = vmatpush1.bf16.msra.mxu1 %v3087_v29  ;;  %1468 = vmatprep.subr.bf16.mxu0 %v3092_v30  ;;  %v3171_v29 = vld [vmem:[#allocation2 + $0x16c] ss:$16 sps:$4 sm:$0xff]   ;;  %v3174_v30 = vld [vmem:[#allocation2 + $0x524] ss:$16 sps:$4 sm:$0xff]  }
  0x6d   :  { %1539 = vmatprep.mubr.bf16.mxu1 %v3512_v34  ;;  %1548 = vmatprep.subr.bf16.mxu1 %v3095_v31  ;;  %v3169_v31 = vld [vmem:[#allocation2 + $0x168] ss:$16 sps:$4 sm:$0xff]  }
  0x6e   :  { %1498 = vmatprep.mubr.bf16.mxu0 %v3648_v6 }
  0x6f   :  { %1469 = vmatpush1.bf16.msra.mxu0 %v3090_v33  ;;  %v3177_v33 = vld [vmem:[#allocation2 + $0x14c] ss:$16 sps:$4 sm:$0xff]  }
  0x70   :  { %1470 = vmatprep.subr.bf16.mxu0 %v3098_v35  ;;  %v3180_v35 = vld [vmem:[#allocation2 + $0x504] ss:$16 sps:$4 sm:$0xff]  }
  0x73   :  { %2800 = vmatmul.mubr.msk.bf16.vlgmr.msra.gmra.mxu1 %vm1380_vm0, %v3629_v36  ;;  %1471 = vmatpush1.bf16.msra.mxu0 %v3096_v38  ;;  %v3178_v38 = vld [vmem:[#allocation2 + $0x500] ss:$16 sps:$4 sm:$0xff]  }
  0x74   :  { %1549 = vmatpush1.bf16.msra.mxu1 %v3093_v37  ;;  %1472 = vmatprep.subr.bf16.mxu0 %v3108_v40  ;;  %v3175_v37 = vld [vmem:[#allocation2 + $0x148] ss:$16 sps:$4 sm:$0xff]   ;;  %v3185_v40 = vld [vmem:[#allocation2 + $0x12c] ss:$16 sps:$4 sm:$0xff]  }
  0x75   :  { %1550 = vmatprep.subr.bf16.mxu1 %v3105_v39  ;;  %1580 = vmatprep.mubr.bf16.mxu1 %v3608_v7  ;;  %v3141_v7 = vld [vmem:[#allocation2 + $0xc] ss:$16 sps:$4 sm:$0xff]   ;;  %v165_v39 = vcombine.low %v3641_v61, %v3644_v0  ;;  %v3207_v61 = vld [vmem:[#allocation2 + $0x4a8] ss:$16 sps:$4 sm:$0xff]  }
  0x76   :  { %v3213_v0 = vld [vmem:[#allocation2 + $0x488] ss:$16 sps:$4 sm:$0xff]  }
  0x77   :  { %1473 = vmatpush1.bf16.msra.mxu0 %v3106_v42  ;;  %v3183_v42 = vld [vmem:[#allocation2 + $0x128] ss:$16 sps:$4 sm:$0xff]  }
  0x78   :  { %1551 = vmatpush1.bf16.msra.mxu1 %v3103_v41  ;;  %1474 = vmatprep.subr.bf16.mxu0 %v3114_v44  ;;  %v3188_v41 = vld [vmem:[#allocation2 + $0x2ec] ss:$16 sps:$4 sm:$0xff]   ;;  %v3186_v44 = vld [vmem:[#allocation2 + $0x2e8] ss:$16 sps:$4 sm:$0xff]  }
  0x79   :  { %1552 = vmatprep.subr.bf16.mxu1 %v3111_v43  ;;  %v3653_v43 = vpack.c.bf16 %v165_v39, %v165_v39  ;;  %v3267_v39 = vld [vmem:[#allocation2 + $0x568] ss:$16 sps:$4 sm:$0xff]  }
  0x7b   :  { %1475 = vmatpush1.bf16.msra.mxu0 %v3112_v47  ;;  %v3194_v47 = vld [vmem:[#allocation2 + $0x2cc] ss:$16 sps:$4 sm:$0xff]  }
  0x7c   :  { %1553 = vmatpush1.bf16.msra.mxu1 %v3109_v45  ;;  %1476 = vmatprep.subr.bf16.mxu0 %v3120_v49  ;;  %v3191_v45 = vld [vmem:[#allocation2 + $0x10c] ss:$16 sps:$4 sm:$0xff]   ;;  %v3192_v49 = vld [vmem:[#allocation2 + $0x2c8] ss:$16 sps:$4 sm:$0xff]  }
  0x7d   :  { %1554 = vmatprep.subr.bf16.mxu1 %v3117_v48  ;;  %v3189_v48 = vld [vmem:[#allocation2 + $0x108] ss:$16 sps:$4 sm:$0xff]  }
  0x7f   :  { %1477 = vmatpush1.bf16.msra.mxu0 %v3118_v51  ;;  %v3200_v51 = vld [vmem:[#allocation2 + $0x2ac] ss:$16 sps:$4 sm:$0xff]  }
  0x80   :  { %1555 = vmatpush1.bf16.msra.mxu1 %v3115_v50  ;;  %1478 = vmatprep.subr.bf16.mxu0 %v3126_v54  ;;  %v3197_v50 = vld [vmem:[#allocation2 + $0x4ec] ss:$16 sps:$4 sm:$0xff]   ;;  %v3198_v54 = vld [vmem:[#allocation2 + $0x2a8] ss:$16 sps:$4 sm:$0xff]  }
  0x81   :  { %1556 = vmatprep.subr.bf16.mxu1 %v3123_v52  ;;  %v3195_v52 = vld [vmem:[#allocation2 + $0x4e8] ss:$16 sps:$4 sm:$0xff]  }
  0x83   :  { %1479 = vmatpush1.bf16.msra.mxu0 %v3124_v56  ;;  %v3206_v56 = vld [vmem:[#allocation2 + $0x28c] ss:$16 sps:$4 sm:$0xff]  }
  0x84   :  { %1557 = vmatpush1.bf16.msra.mxu1 %v3121_v55  ;;  %1480 = vmatprep.subr.bf16.mxu0 %v3132_v58  ;;  %v3203_v55 = vld [vmem:[#allocation2 + $0x4cc] ss:$16 sps:$4 sm:$0xff]   ;;  %v3204_v58 = vld [vmem:[#allocation2 + $0x288] ss:$16 sps:$4 sm:$0xff]  }
  0x85   :  { %1558 = vmatprep.subr.bf16.mxu1 %v3129_v57  ;;  %v3201_v57 = vld [vmem:[#allocation2 + $0x4c8] ss:$16 sps:$4 sm:$0xff]  }
  0x87   :  { %1481 = vmatpush1.bf16.msra.mxu0 %v3130_v63  ;;  %v3218_v63 = vld [vmem:[#allocation2 + $0x24c] ss:$16 sps:$4 sm:$0xff]  }
  0x88   :  { %1559 = vmatpush1.bf16.msra.mxu1 %v3127_v62  ;;  %1482 = vmatprep.subr.bf16.mxu0 %v3138_v2  ;;  %v3215_v62 = vld [vmem:[#allocation2 + $0x48c] ss:$16 sps:$4 sm:$0xff]  }
  0x89   :  { %1560 = vmatprep.subr.bf16.mxu1 %v3135_v1  ;;  %v3221_v1 = vld [vmem:[#allocation2 + $0x46c] ss:$16 sps:$4 sm:$0xff]  }
  0x8a   :  { %v3224_v2 = vld [vmem:[#allocation2 + $0x22c] ss:$16 sps:$4 sm:$0xff]  }
  0x8b   :  { %1483 = vmatpush2.bf16.msra.mxu0 %v3136_v5  ;;  %v3227_v5 = vld [vmem:[#allocation2 + $0x44c] ss:$16 sps:$4 sm:$0xff]  }
  0x8c   :  { %1561 = vmatpush1.bf16.msra.mxu1 %v3133_v4  ;;  %1484 = vmatprep.subr.bf16.mxu0 %v3144_v53  ;;  %v3222_v4 = vld [vmem:[#allocation2 + $0x228] ss:$16 sps:$4 sm:$0xff]  }
  0x8d   :  { %1562 = vmatprep.subr.bf16.mxu1 %v3141_v7  ;;  %v3225_v7 = vld [vmem:[#allocation2 + $0x448] ss:$16 sps:$4 sm:$0xff]  }
  0x8e   :  { %v3228_v53 = vld [vmem:[#allocation2 + $0x208] ss:$16 sps:$4 sm:$0xff]  }
  0x8f   :  { %1485 = vmatpush2.bf16.msra.mxu0 %v3142_v9  ;;  %v3236_v9 = vld [vmem:[#allocation2 + $0x3ec] ss:$16 sps:$4 sm:$0xff]  }
  0x90   :  { %1563 = vmatpush1.bf16.msra.mxu1 %v3139_v8  ;;  %1486 = vmatprep.subr.bf16.mxu0 %v3150_v12  ;;  %v3233_v8 = vld [vmem:[#allocation2 + $0x42c] ss:$16 sps:$4 sm:$0xff]   ;;  %v3234_v12 = vld [vmem:[#allocation2 + $0x3e8] ss:$16 sps:$4 sm:$0xff]  }
  0x91   :  { %1564 = vmatprep.subr.bf16.mxu1 %v3147_v11  ;;  %v3231_v11 = vld [vmem:[#allocation2 + $0x428] ss:$16 sps:$4 sm:$0xff]  }
  0x93   :  { %1487 = vmatpush2.bf16.msra.mxu0 %v3148_v14  ;;  %v3242_v14 = vld [vmem:[#allocation2 + $0x3cc] ss:$16 sps:$4 sm:$0xff]  }
  0x94   :  { %1565 = vmatpush2.bf16.msra.mxu1 %v3145_v13  ;;  %1488 = vmatprep.subr.bf16.mxu0 %v3156_v16  ;;  %v3239_v13 = vld [vmem:[#allocation2 + $0x40c] ss:$16 sps:$4 sm:$0xff]   ;;  %v3240_v16 = vld [vmem:[#allocation2 + $0x3c8] ss:$16 sps:$4 sm:$0xff]  }
  0x95   :  { %1566 = vmatprep.subr.bf16.mxu1 %v3153_v15  ;;  %v3237_v15 = vld [vmem:[#allocation2 + $0x408] ss:$16 sps:$4 sm:$0xff]  }
  0x97   :  { %1489 = vmatpush2.bf16.msra.mxu0 %v3154_v18  ;;  %v3248_v18 = vld [vmem:[#allocation2 + $0x3ac] ss:$16 sps:$4 sm:$0xff]  }
  0x98   :  { %1567 = vmatpush2.bf16.msra.mxu1 %v3151_v17  ;;  %1490 = vmatprep.subr.bf16.mxu0 %v3162_v20  ;;  %v3245_v17 = vld [vmem:[#allocation2 + $0x5ec] ss:$16 sps:$4 sm:$0xff]   ;;  %v3246_v20 = vld [vmem:[#allocation2 + $0x3a8] ss:$16 sps:$4 sm:$0xff]  }
  0x99   :  { %1568 = vmatprep.subr.bf16.mxu1 %v3159_v19  ;;  %v3243_v19 = vld [vmem:[#allocation2 + $0x5e8] ss:$16 sps:$4 sm:$0xff]  }
  0x9b   :  { %1491 = vmatpush2.bf16.msra.mxu0 %v3160_v22  ;;  %v3254_v22 = vld [vmem:[#allocation2 + $0x38c] ss:$16 sps:$4 sm:$0xff]  }
  0x9c   :  { %1569 = vmatpush2.bf16.msra.mxu1 %v3157_v21  ;;  %1492 = vmatprep.subr.bf16.mxu0 %v3168_v26  ;;  %v3251_v21 = vld [vmem:[#allocation2 + $0x5cc] ss:$16 sps:$4 sm:$0xff]   ;;  %v3252_v26 = vld [vmem:[#allocation2 + $0x388] ss:$16 sps:$4 sm:$0xff]  }
  0x9d   :  { %1570 = vmatprep.subr.bf16.mxu1 %v3165_v23  ;;  %v3249_v23 = vld [vmem:[#allocation2 + $0x5c8] ss:$16 sps:$4 sm:$0xff]  }
  0x9f   :  { %1493 = vmatpush2.bf16.msra.mxu0 %v3166_v28  ;;  %v3260_v28 = vld [vmem:[#allocation2 + $0x36c] ss:$16 sps:$4 sm:$0xff]  }
  0xa0   :  { %1571 = vmatpush2.bf16.msra.mxu1 %v3163_v27  ;;  %1494 = vmatprep.subr.bf16.mxu0 %v3174_v30  ;;  %v3257_v27 = vld [vmem:[#allocation2 + $0x5ac] ss:$16 sps:$4 sm:$0xff]   ;;  %v3258_v30 = vld [vmem:[#allocation2 + $0x368] ss:$16 sps:$4 sm:$0xff]  }
  0xa1   :  { %1572 = vmatprep.subr.bf16.mxu1 %v3171_v29  ;;  %v3255_v29 = vld [vmem:[#allocation2 + $0x5a8] ss:$16 sps:$4 sm:$0xff]  }
  0xa3   :  { %1495 = vmatpush2.bf16.msra.mxu0 %v3172_v32  ;;  %v3266_v32 = vld [vmem:[#allocation2 + $0x34c] ss:$16 sps:$4 sm:$0xff]  }
  0xa4   :  { %1573 = vmatpush2.bf16.msra.mxu1 %v3169_v31  ;;  %1496 = vmatprep.subr.bf16.mxu0 %v3180_v35  ;;  %v3263_v31 = vld [vmem:[#allocation2 + $0x58c] ss:$16 sps:$4 sm:$0xff]   ;;  %v3264_v35 = vld [vmem:[#allocation2 + $0x348] ss:$16 sps:$4 sm:$0xff]  }
  0xa5   :  { %1574 = vmatprep.subr.bf16.mxu1 %v3177_v33  ;;  %v3261_v33 = vld [vmem:[#allocation2 + $0x588] ss:$16 sps:$4 sm:$0xff]  }
  0xa7   :  { %1497 = vmatpush2.bf16.msra.mxu0 %v3178_v38  ;;  %v3272_v38 = vld [vmem:[#allocation2 + $0x32c] ss:$16 sps:$4 sm:$0xff]  }
  0xa8   :  { %1575 = vmatpush2.bf16.msra.mxu1 %v3175_v37  ;;  %1589 = vmatprep.subr.bf16.mxu0 %v3188_v41  ;;  %v3269_v37 = vld [vmem:[#allocation2 + $0x56c] ss:$16 sps:$4 sm:$0xff]  }
  0xa9   :  { %1576 = vmatprep.subr.bf16.mxu1 %v3185_v40  ;;  %v3270_v40 = vld [vmem:[#allocation2 + $0x328] ss:$16 sps:$4 sm:$0xff]   ;;  %v3275_v41 = vld [vmem:[#allocation2 + $0x54c] ss:$16 sps:$4 sm:$0xff]  }
  0xaa   :  { %1499 = vmatmul.mubr.bf16.vlgmr.msra.gmra.mxu0 %v3653_v43 }
  0xab   :  { %1590 = vmatpush1.bf16.msra.mxu0 %v3186_v44  ;;  %1621 = vmatprep.mubr.bf16.mxu0 %v3610_v10  ;;  %v3210_v10 = vld [vmem:[#allocation2 + $0x268] ss:$16 sps:$4 sm:$0xff]  }
  0xac   :  { %1577 = vmatpush2.bf16.msra.mxu1 %v3183_v42  ;;  %1591 = vmatprep.subr.bf16.mxu0 %v3194_v47  ;;  %v3278_v42 = vld [vmem:[#allocation2 + $0x30c] ss:$16 sps:$4 sm:$0xff]   ;;  %v3273_v44 = vld [vmem:[#allocation2 + $0x548] ss:$16 sps:$4 sm:$0xff]  }
  0xad   :  { %1578 = vmatprep.subr.bf16.mxu1 %v3191_v45  ;;  %v3276_v45 = vld [vmem:[#allocation2 + $0x308] ss:$16 sps:$4 sm:$0xff]   ;;  %v3281_v47 = vld [vmem:[#allocation2 + $0x52c] ss:$16 sps:$4 sm:$0xff]  }
  0xaf   :  { %1592 = vmatpush1.bf16.msra.mxu0 %v3192_v49  ;;  %v3279_v49 = vld [vmem:[#allocation2 + $0x528] ss:$16 sps:$4 sm:$0xff]  }
  0xb0   :  { %1579 = vmatpush2.bf16.msra.mxu1 %v3189_v48  ;;  %1593 = vmatprep.subr.bf16.mxu0 %v3200_v51  ;;  %v3290_v48 = vld [vmem:[#allocation5 + $0x74] ss:$8 sps:$4 sm:$0xff]  }
  0xb1   :  { %1630 = vmatprep.subr.bf16.mxu1 %v3197_v50  ;;  %v3288_v50 = vld [vmem:[#allocation5 + $0x70] ss:$8 sps:$4 sm:$0xff]   ;;  %v3284_v51 = vld [vmem:[#allocation2 + $0x50c] ss:$16 sps:$4 sm:$0xff]  }
  0xb3   :  { %1581 = vmatmul.mubr.bf16.vlgmr.msra.gmra.mxu1 %v3620_v24  ;;  %1594 = vmatpush1.bf16.msra.mxu0 %v3198_v54  ;;  %v3216_v24 = vld [vmem:[#allocation2 + $0x248] ss:$16 sps:$4 sm:$0xff]  }
  0xb4   :  { %1631 = vmatpush1.bf16.msra.mxu1 %v3195_v52  ;;  %1595 = vmatprep.subr.bf16.mxu0 %v3206_v56  ;;  %v3293_v52 = vld [vmem:[#allocation5 + $0x64] ss:$8 sps:$4 sm:$0xff]   ;;  %v3282_v54 = vld [vmem:[#allocation2 + $0x508] ss:$16 sps:$4 sm:$0xff]  }
  0xb5   :  { %1632 = vmatprep.subr.bf16.mxu1 %v3203_v55  ;;  %1662 = vmatprep.mubr.bf16.mxu1 %v3648_v6  ;;  %v3230_v6 = vld [vmem:[#allocation2 + $0x20c] ss:$16 sps:$4 sm:$0xff]   ;;  %v3291_v55 = vld [vmem:[#allocation5 + $0x60] ss:$8 sps:$4 sm:$0xff]  }
  0xb6   :  { %v3287_v56 = vld [vmem:[#allocation2 + $0x60c] ss:$16 sps:$4 sm:$0xff]  }
  0xb7   :  { %1596 = vmatpush1.bf16.msra.mxu0 %v3204_v58  ;;  %v3285_v58 = vld [vmem:[#allocation2 + $0x608] ss:$16 sps:$4 sm:$0xff]  }
  0xb8   :  { %1633 = vmatpush1.bf16.msra.mxu1 %v3201_v57  ;;  %1597 = vmatprep.subr.bf16.mxu0 %v3212_v60  ;;  %v3296_v57 = vld [vmem:[#allocation5 + $0x54] ss:$8 sps:$4 sm:$0xff]   ;;  %v3299_v60 = vld [vmem:[#allocation5 + $0x44] ss:$8 sps:$4 sm:$0xff]  }
  0xb9   :  { %1634 = vmatprep.subr.bf16.mxu1 %v3209_v59  ;;  %v3294_v59 = vld [vmem:[#allocation5 + $0x50] ss:$8 sps:$4 sm:$0xff]  }
  0xbb   :  { %1598 = vmatpush1.bf16.msra.mxu0 %v3210_v10  ;;  %v3300_v10 = vld [vmem:[#allocation5 + $0x30] ss:$8 sps:$4 sm:$0xff]  }
  0xbc   :  { %1635 = vmatpush1.bf16.msra.mxu1 %v3207_v61  ;;  %1599 = vmatprep.subr.bf16.mxu0 %v3218_v63  ;;  %v3302_v61 = vld [vmem:[#allocation5 + $0x34] ss:$8 sps:$4 sm:$0xff]  }
  0xbd   :  { %1636 = vmatprep.subr.bf16.mxu1 %v3215_v62  ;;  %v3336_v62 = vld [vmem:[#allocation5 + $0x170] ss:$8 sps:$4 sm:$0xff]   ;;  %v3338_v63 = vld [vmem:[#allocation5 + $0x174] ss:$8 sps:$4 sm:$0xff]  }
  0xbf   :  { %1600 = vmatpush1.bf16.msra.mxu0 %v3216_v24  ;;  %v3341_v24 = vld [vmem:[#allocation5 + $0x164] ss:$8 sps:$4 sm:$0xff]  }
  0xc0   :  { %1637 = vmatpush1.bf16.msra.mxu1 %v3213_v0  ;;  %1601 = vmatprep.subr.bf16.mxu0 %v3224_v2  ;;  %v3305_v0 = vld [vmem:[#allocation5 + $0x24] ss:$8 sps:$4 sm:$0xff]   ;;  %v3308_v2 = vld [vmem:[#allocation5 + $0x14] ss:$8 sps:$4 sm:$0xff]  }
  0xc1   :  { %1638 = vmatprep.subr.bf16.mxu1 %v3221_v1  ;;  %v3303_v1 = vld [vmem:[#allocation5 + $0x20] ss:$8 sps:$4 sm:$0xff]  }
  0xc3   :  { %1602 = vmatpush1.bf16.msra.mxu0 %v3222_v4  ;;  %v3306_v4 = vld [vmem:[#allocation5 + $0x10] ss:$8 sps:$4 sm:$0xff]  }
  0xc4   :  { %1639 = vmatpush1.bf16.msra.mxu1 %v3219_v3  ;;  %1603 = vmatprep.subr.bf16.mxu0 %v3230_v6  ;;  %v3342_v3 = vld [vmem:[#allocation5 + $0x150] ss:$8 sps:$4 sm:$0xff]   ;;  %v3311_v6 = vld [vmem:[#allocation5 + $0x4] ss:$8 sps:$4 sm:$0xff]  }
  0xc5   :  { %1640 = vmatprep.subr.bf16.mxu1 %v3227_v5  ;;  %v3347_v5 = vld [vmem:[#allocation5 + $0x144] ss:$8 sps:$4 sm:$0xff]  }
  0xc7   :  { %1604 = vmatpush1.bf16.msra.mxu0 %v3228_v53  ;;  %v3350_v53 = vld [vmem:[#allocation5 + $0x134] ss:$8 sps:$4 sm:$0xff]  }
  0xc8   :  { %1641 = vmatpush1.bf16.msra.mxu1 %v3225_v7  ;;  %1605 = vmatprep.subr.bf16.mxu0 %v3236_v9  ;;  %v3345_v7 = vld [vmem:[#allocation5 + $0x140] ss:$8 sps:$4 sm:$0xff]   ;;  %v3348_v9 = vld [vmem:[#allocation5 + $0x130] ss:$8 sps:$4 sm:$0xff]  }
  0xc9   :  { %1642 = vmatprep.subr.bf16.mxu1 %v3233_v8  ;;  %v3314_v8 = vld [vmem:[#allocation5 + $0xf4] ss:$8 sps:$4 sm:$0xff]  }
  0xcb   :  { %1606 = vmatpush2.bf16.msra.mxu0 %v3234_v12  ;;  %v3353_v12 = vld [vmem:[#allocation5 + $0x124] ss:$8 sps:$4 sm:$0xff]  }
  0xcc   :  { %1643 = vmatpush1.bf16.msra.mxu1 %v3231_v11  ;;  %1607 = vmatprep.subr.bf16.mxu0 %v3242_v14  ;;  %v3312_v11 = vld [vmem:[#allocation5 + $0xf0] ss:$8 sps:$4 sm:$0xff]   ;;  %v3351_v14 = vld [vmem:[#allocation5 + $0x120] ss:$8 sps:$4 sm:$0xff]  }
  0xcd   :  { %1644 = vmatprep.subr.bf16.mxu1 %v3239_v13  ;;  %v3317_v13 = vld [vmem:[#allocation5 + $0xe4] ss:$8 sps:$4 sm:$0xff]  }
  0xcf   :  { %1608 = vmatpush2.bf16.msra.mxu0 %v3240_v16  ;;  %v3356_v16 = vld [vmem:[#allocation5 + $0x114] ss:$8 sps:$4 sm:$0xff]  }
  0xd0   :  { %1645 = vmatpush1.bf16.msra.mxu1 %v3237_v15  ;;  %1609 = vmatprep.subr.bf16.mxu0 %v3248_v18  ;;  %v3315_v15 = vld [vmem:[#allocation5 + $0xe0] ss:$8 sps:$4 sm:$0xff]   ;;  %v3354_v18 = vld [vmem:[#allocation5 + $0x110] ss:$8 sps:$4 sm:$0xff]  }
  0xd1   :  { %1646 = vmatprep.subr.bf16.mxu1 %v3245_v17  ;;  %v3320_v17 = vld [vmem:[#allocation5 + $0xd4] ss:$8 sps:$4 sm:$0xff]  }
  0xd3   :  { %1610 = vmatpush2.bf16.msra.mxu0 %v3246_v20  ;;  %v3359_v20 = vld [vmem:[#allocation5 + $0x104] ss:$8 sps:$4 sm:$0xff]  }
  0xd4   :  { %1647 = vmatpush2.bf16.msra.mxu1 %v3243_v19  ;;  %1611 = vmatprep.subr.bf16.mxu0 %v3254_v22  ;;  %v3318_v19 = vld [vmem:[#allocation5 + $0xd0] ss:$8 sps:$4 sm:$0xff]   ;;  %v3357_v22 = vld [vmem:[#allocation5 + $0x100] ss:$8 sps:$4 sm:$0xff]  }
  0xd5   :  { %1648 = vmatprep.subr.bf16.mxu1 %v3251_v21  ;;  %v3323_v21 = vld [vmem:[#allocation5 + $0xc4] ss:$8 sps:$4 sm:$0xff]  }
  0xd7   :  { %1612 = vmatpush2.bf16.msra.mxu0 %v3252_v26  ;;  %v3362_v26 = vld [vmem:[#allocation5 + $0x1f4] ss:$8 sps:$4 sm:$0xff]  }
  0xd8   :  { %1649 = vmatpush2.bf16.msra.mxu1 %v3249_v23  ;;  %1613 = vmatprep.subr.bf16.mxu0 %v3260_v28  ;;  %v3321_v23 = vld [vmem:[#allocation5 + $0xc0] ss:$8 sps:$4 sm:$0xff]   ;;  %v3360_v28 = vld [vmem:[#allocation5 + $0x1f0] ss:$8 sps:$4 sm:$0xff]  }
  0xd9   :  { %1650 = vmatprep.subr.bf16.mxu1 %v3257_v27  ;;  %v3326_v27 = vld [vmem:[#allocation5 + $0xb4] ss:$8 sps:$4 sm:$0xff]  }
  0xdb   :  { %1614 = vmatpush2.bf16.msra.mxu0 %v3258_v30  ;;  %v3365_v30 = vld [vmem:[#allocation5 + $0x1e4] ss:$8 sps:$4 sm:$0xff]  }
  0xdc   :  { %1651 = vmatpush2.bf16.msra.mxu1 %v3255_v29  ;;  %1615 = vmatprep.subr.bf16.mxu0 %v3266_v32  ;;  %v3324_v29 = vld [vmem:[#allocation5 + $0xb0] ss:$8 sps:$4 sm:$0xff]   ;;  %v3363_v32 = vld [vmem:[#allocation5 + $0x1e0] ss:$8 sps:$4 sm:$0xff]  }
  0xdd   :  { %1652 = vmatprep.subr.bf16.mxu1 %v3263_v31  ;;  %v3329_v31 = vld [vmem:[#allocation5 + $0xa4] ss:$8 sps:$4 sm:$0xff]  }
  0xdf   :  { %1616 = vmatpush2.bf16.msra.mxu0 %v3264_v35  ;;  %v3332_v35 = vld [vmem:[#allocation5 + $0x94] ss:$8 sps:$4 sm:$0xff]  }
  0xe0   :  { %1653 = vmatpush2.bf16.msra.mxu1 %v3261_v33  ;;  %1617 = vmatprep.subr.bf16.mxu0 %v3272_v38  ;;  %v3327_v33 = vld [vmem:[#allocation5 + $0xa0] ss:$8 sps:$4 sm:$0xff]   ;;  %v3335_v38 = vld [vmem:[#allocation5 + $0x84] ss:$8 sps:$4 sm:$0xff]  }
  0xe1   :  { %1654 = vmatprep.subr.bf16.mxu1 %v3269_v37  ;;  %v3330_v37 = vld [vmem:[#allocation5 + $0x90] ss:$8 sps:$4 sm:$0xff]  }
  0xe3   :  { %1618 = vmatpush2.bf16.msra.mxu0 %v3270_v40 }
  0xe4   :  { %1655 = vmatpush2.bf16.msra.mxu1 %v3267_v39  ;;  %1619 = vmatprep.subr.bf16.mxu0 %v3278_v42  ;;  %v3333_v39 = vld [vmem:[#allocation5 + $0x80] ss:$8 sps:$4 sm:$0xff]   ;;  %v3368_v42 = vld [vmem:[#allocation5 + $0x1d4] ss:$8 sps:$4 sm:$0xff]  }
  0xe5   :  { %1656 = vmatprep.subr.bf16.mxu1 %v3275_v41 }
  0xe7   :  { %1620 = vmatpush2.bf16.msra.mxu0 %v3276_v45 }
  0xe8   :  { %1657 = vmatpush2.bf16.msra.mxu1 %v3273_v44  ;;  %2116 = vmatprep.subr.bf16.mxu0 %v3290_v48  ;;  %v3366_v44 = vld [vmem:[#allocation5 + $0x1d0] ss:$8 sps:$4 sm:$0xff]   ;;  %v3369_v48 = vld [vmem:[#allocation5 + $0x1c0] ss:$8 sps:$4 sm:$0xff]  }
  0xe9   :  { %1658 = vmatprep.subr.bf16.mxu1 %v3281_v47 }
  0xea   :  { %1622 = vmatmul.mubr.bf16.vlgmr.msra.gmra.mxu0 %v3622_v25  ;;  %v3297_v25 = vld [vmem:[#allocation5 + $0x40] ss:$8 sps:$4 sm:$0xff]  }
  0xeb   :  { %2117 = vmatpush1.bf16.msra.mxu0 %v3288_v50 }
  0xec   :  { %1659 = vmatpush2.bf16.msra.mxu1 %v3279_v49  ;;  %2118 = vmatprep.subr.bf16.mxu0 %v3293_v52  ;;  %v3371_v49 = vld [vmem:[#allocation5 + $0x1c4] ss:$8 sps:$4 sm:$0xff]  }
  0xed   :  { %1660 = vmatprep.subr.bf16.mxu1 %v3284_v51 }
  0xef   :  { %2119 = vmatpush1.bf16.msra.mxu0 %v3291_v55 }
  0xf0   :  { %1661 = vmatpush2.bf16.msra.mxu1 %v3282_v54  ;;  %2120 = vmatprep.subr.bf16.mxu0 %v3296_v57  ;;  %v3372_v57 = vld [vmem:[#allocation5 + $0x1b0] ss:$8 sps:$4 sm:$0xff]  }
  0xf1   :  { %1685 = vmatprep.subr.bf16.mxu1 %v3287_v56  ;;  %v3374_v56 = vld [vmem:[#allocation5 + $0x1b4] ss:$8 sps:$4 sm:$0xff]  }
  0xf3   :  { %1663 = vmatmul.mubr.bf16.vlgmr.msra.gmra.mxu1 %v3653_v43  ;;  %2121 = vmatpush1.bf16.msra.mxu0 %v3294_v59  ;;  %v3339_v43 = vld [vmem:[#allocation5 + $0x160] ss:$8 sps:$4 sm:$0xff]  }
  0xf4   :  { %1686 = vmatpush1.bf16.msra.mxu1 %v3285_v58  ;;  %1703 = vmatprep.mubr.bf16.mxu1 %v3512_v34  ;;  %v3344_v34 = vld [vmem:[#allocation5 + $0x154] ss:$8 sps:$4 sm:$0xff]  }
  0xf5   :  { %2122 = vmatprep.subr.bf16.mxu0 %v3299_v60  ;;  %2157 = vmatprep.subr.bf16.mxu1 %v3338_v63  ;;  %v3377_v60 = vld [vmem:[#allocation5 + $0x1a4] ss:$8 sps:$4 sm:$0xff]  }
  0xf6   :  { %v3383_v63 = vld [vmem:[#allocation5 + $0x184] ss:$8 sps:$4 sm:$0xff]  }
  0xf7   :  { %2123 = vmatpush1.bf16.msra.mxu0 %v3297_v25  ;;  %v3375_v25 = vld [vmem:[#allocation5 + $0x1a0] ss:$8 sps:$4 sm:$0xff]  }
  0xf8   :  { %2124 = vmatprep.subr.bf16.mxu0 %v3302_v61 }
  0xfb   :  { %2801 = vmatmul.mubr.msk.bf16.vlgmr.msra.gmra.mxu1 %vm1380_vm0, %v3629_v36  ;;  %2125 = vmatpush1.bf16.msra.mxu0 %v3300_v10  ;;  %v3309_v36 = vld [vmem:[#allocation5] ss:$8 sps:$4 sm:$0xff]   ;;  %v3380_v10 = vld [vmem:[#allocation5 + $0x194] ss:$8 sps:$4 sm:$0xff]  }
  0xfc   :  { %2158 = vmatpush1.bf16.msra.mxu1 %v3336_v62  ;;  %2126 = vmatprep.subr.bf16.mxu0 %v3305_v0  ;;  %v3378_v62 = vld [vmem:[#allocation5 + $0x190] ss:$8 sps:$4 sm:$0xff]   ;;  %v3381_v0 = vld [vmem:[#allocation5 + $0x180] ss:$8 sps:$4 sm:$0xff]  }
  0xfd   :  { %2159 = vmatprep.subr.bf16.mxu1 %v3341_v24  ;;  %v382_v24 = vsub.s32 0, %v3587_v46 }
  0xff   :  { %2127 = vmatpush1.bf16.msra.mxu0 %v3303_v1  ;;  %v386_v1 = vsub.s32 1, %v3587_v46 }
 0x100   :  { %2160 = vmatpush1.bf16.msra.mxu1 %v3339_v43  ;;  %2128 = vmatprep.subr.bf16.mxu0 %v3308_v2  ;;  %v378_v43 = vld [vmem:[%s3746_s2] sm:$0xf] }
 0x101   :  { %2161 = vmatprep.subr.bf16.mxu1 %v3344_v34  ;;  %v383_v34 = vrot.slane %v378_v43, %v382_v24  ;;  %v387_v2 = vrot.slane %v378_v43, %v386_v1 }
 0x103   :  { %2129 = vmatpush1.bf16.msra.mxu0 %v3306_v4 }
 0x104   :  { %2162 = vmatpush1.bf16.msra.mxu1 %v3342_v3  ;;  %2130 = vmatprep.subr.bf16.mxu0 %v3311_v6 }
 0x105   :  { %2163 = vmatprep.subr.bf16.mxu1 %v3347_v5 }
 0x107   :  { %2131 = vmatpush1.bf16.msra.mxu0 %v3309_v36 }
 0x108   :  { %2164 = vmatpush1.bf16.msra.mxu1 %v3345_v7  ;;  %2132 = vmatprep.subr.bf16.mxu0 %v3314_v8 }
 0x109   :  { %2165 = vmatprep.subr.bf16.mxu1 %v3350_v53 }
 0x10b   :  { %2133 = vmatpush2.bf16.msra.mxu0 %v3312_v11 }
 0x10c   :  { %2166 = vmatpush1.bf16.msra.mxu1 %v3348_v9  ;;  %2134 = vmatprep.subr.bf16.mxu0 %v3317_v13 }
 0x10d   :  { %2167 = vmatprep.subr.bf16.mxu1 %v3353_v12 }
 0x10f   :  { %2135 = vmatpush2.bf16.msra.mxu0 %v3315_v15 }
 0x110   :  { %2168 = vmatpush1.bf16.msra.mxu1 %v3351_v14  ;;  %2136 = vmatprep.subr.bf16.mxu0 %v3320_v17 }
 0x111   :  { %2169 = vmatprep.subr.bf16.mxu1 %v3356_v16 }
 0x113   :  { %2137 = vmatpush2.bf16.msra.mxu0 %v3318_v19 }
 0x114   :  { %2170 = vmatpush1.bf16.msra.mxu1 %v3354_v18  ;;  %2138 = vmatprep.subr.bf16.mxu0 %v3323_v21 }
 0x115   :  { %2171 = vmatprep.subr.bf16.mxu1 %v3359_v20 }
 0x117   :  { %2139 = vmatpush2.bf16.msra.mxu0 %v3321_v23 }
 0x118   :  { %2172 = vmatpush1.bf16.msra.mxu1 %v3357_v22  ;;  %2140 = vmatprep.subr.bf16.mxu0 %v3326_v27 }
 0x119   :  { %2173 = vmatprep.subr.bf16.mxu1 %v3362_v26  ;;  %v390_v26 = vsub.s32 2, %v3587_v46 }
 0x11b   :  { %2141 = vmatpush2.bf16.msra.mxu0 %v3324_v29 }
 0x11c   :  { %2174 = vmatpush2.bf16.msra.mxu1 %v3360_v28  ;;  %2142 = vmatprep.subr.bf16.mxu0 %v3329_v31  ;;  %v394_v28 = vsub.s32 3, %v3587_v46  ;;  %v3406_v46 = vld [vmem:[%s3751_s7 + $0x8] sm:$0xff]  }
 0x11d   :  { %2175 = vmatprep.subr.bf16.mxu1 %v3365_v30  ;;  %v391_v30 = vrot.slane %v378_v43, %v390_v26 }
 0x11f   :  { %2143 = vmatpush2.bf16.msra.mxu0 %v3327_v33 }
 0x120   :  { %2176 = vmatpush2.bf16.msra.mxu1 %v3363_v32  ;;  %2144 = vmatprep.subr.bf16.mxu0 %v3332_v35  ;;  %v395_v32 = vrot.slane %v378_v43, %v394_v28  ;;  %v3394_v43 = vld [vmem:[#allocation7 + $0x50] sm:$0xff]  }
 0x121   :  { %2177 = vmatprep.subr.bf16.mxu1 %v3368_v42 }
 0x123   :  { %2145 = vmatpush2.bf16.msra.mxu0 %v3330_v37 }
 0x124   :  { %2146 = vmatprep.subr.bf16.mxu0 %v3335_v38  ;;  %2178 = vmatpush2.bf16.msra.mxu1 %v3366_v44 }
 0x125   :  { %2179 = vmatprep.subr.bf16.mxu1 %v3371_v49  ;;  %v3384_v49 = vld [vmem:[#allocation7 + $0x78] sm:$0xff]  }
 0x127   :  { %2147 = vmatpush2.bf16.msra.mxu0 %v3333_v39 }
 0x128   :  { %2180 = vmatpush2.bf16.msra.mxu1 %v3369_v48  ;;  %2898 = vmatprep.subr.bf16.mxu0 %v3384_v49  ;;  %v2883_v49 = vld [vmem:[%s3752_s8] ss:$0 sm:$0xff] }
 0x129   :  { %2181 = vmatprep.subr.bf16.mxu1 %v3374_v56 }
 0x12a   :  { %v1418_v40 = vpop.f32.mrf.mxu0 }
 0x12b   :  { %v1459_v41 = vpop.f32.mrf.mxu1  ;;  %v1419_v3 = vadd.f32 %v1418_v40, %v383_v34  ;;  %v3395_v34 = vld [vmem:[#allocation7 + $0x10] sm:$0xff]  }
 0x12c   :  { %v1420_v45 = vpop.f32.mrf.mxu0  ;;  %2182 = vmatpush2.bf16.msra.mxu1 %v3372_v57  ;;  %v3387_v57 = vld [vmem:[#allocation7 + $0x30] sm:$0xff]  }
 0x12d   :  { %v1461_v47 = vpop.f32.mrf.mxu1  ;;  %2183 = vmatprep.subr.bf16.mxu1 %v3377_v60  ;;  %v1421_v4 = vadd.f32 %v1420_v45, %v387_v2  ;;  %v1460_v5 = vadd.f32 %v1459_v41, %v1419_v3  ;;  %v3396_v2 = vld [vmem:[#allocation7 + $0x48] sm:$0xff]  }
 0x12e   :  { %v1422_v51 = vpop.f32.mrf.mxu0  ;;  %v3397_v3 = vld [vmem:[#allocation7 + $0x8] sm:$0xff]  }
 0x12f   :  { %v1463_v50 = vpop.f32.mrf.mxu1  ;;  %v1462_v7 = vadd.f32 %v1461_v47, %v1421_v4  ;;  %v3386_v51 = vld [vmem:[#allocation7 + $0x70] sm:$0xff]   ;;  %v3398_v4 = vld [vmem:[#allocation7 + $0x40] sm:$0xff]  }
 0x130   :  { %v1423_v54 = vpop.f32.mrf.mxu0  ;;  %2184 = vmatpush2.bf16.msra.mxu1 %v3375_v25  ;;  %v3385_v50 = vld [vmem:[#allocation7 + $0x38] sm:$0xff]  }
 0x131   :  { %v1464_v52 = vpop.f32.mrf.mxu1  ;;  %2185 = vmatprep.subr.bf16.mxu1 %v3380_v10  ;;  %v3390_v10 = vld [vmem:[#allocation7 + $0x60] sm:$0xff]  }
 0x133   :  { %v1541_v55 = vpop.f32.mrf.mxu1 }
 0x134   :  { %2186 = vmatpush2.bf16.msra.mxu1 %v3378_v62  ;;  %v3391_v62 = vld [vmem:[#allocation7 + $0x20] sm:$0xff]  }
 0x135   :  { %v1543_v58 = vpop.f32.mrf.mxu1  ;;  %2187 = vmatprep.subr.bf16.mxu1 %v3383_v63  ;;  %v3392_v63 = vld [vmem:[#allocation7 + $0x58] sm:$0xff]  }
 0x137   :  { %v1545_v59 = vpop.f32.mrf.mxu1 }
 0x138   :  { %2188 = vmatpush2.bf16.msra.mxu1 %v3381_v0  ;;  %v3388_v59 = vld [vmem:[#allocation7 + $0x68] sm:$0xff]   ;;  %v3393_v0 = vld [vmem:[#allocation7 + $0x18] sm:$0xff]  }
 0x139   :  { %v1546_v61 = vpop.f32.mrf.mxu1 }
 0x13a   :  { %v3389_v61 = vld [vmem:[#allocation7 + $0x28] sm:$0xff]  }
 0x16a   :  { %v1500_v6 = vpop.f32.mrf.mxu0 }
 0x16b   :  { %v1501_v36 = vadd.f32 %v1500_v6, %v1460_v5  ;;  %v3399_v5 = vld [vmem:[#allocation7] sm:$0xff]   ;;  %v3400_v6 = vld [vmem:[%s3751_s7 + $0x38] sm:$0xff]  }
 0x16c   :  { %v1502_v53 = vpop.f32.mrf.mxu0 }
 0x16d   :  { %v1542_v8 = vadd.f32 %v1541_v55, %v1501_v36  ;;  %v1503_v9 = vadd.f32 %v1502_v53, %v1462_v7  ;;  %v3513_v7 = vmov 0.0   ;;  %v3401_v36 = vld [vmem:[%s3751_s7 + $0x30] sm:$0xff]   ;;  %v3402_v53 = vld [vmem:[%s3751_s7 + $0x28] sm:$0xff]  }
 0x16e   :  { %v1504_v11 = vpop.f32.mrf.mxu0  ;;  %2934 = vmatprep.subr.bf16.mxu1 %v3513_v7 }
 0x16f   :  { %v1544_v12 = vadd.f32 %v1543_v58, %v1503_v9  ;;  %v1712_v13 = vmax.f32 %v1542_v8, 0.0  ;;  %v3403_v8 = vld [vmem:[%s3751_s7 + $0x20] sm:$0xff]   ;;  %v3404_v9 = vld [vmem:[%s3751_s7 + $0x18] sm:$0xff]  }
 0x170   :  { %v1505_v14 = vpop.f32.mrf.mxu0 }
 0x171   :  { %v1713_v15 = vmax.f32 %v1544_v12, 0.0  ;;  %v1716_v18 = vpack.c.bf16 %v1712_v13, %v1712_v13 }
 0x173   :  { %v1582_v16 = vpop.f32.mrf.mxu1  ;;  %v1717_v17 = vpack.c.bf16 %v1713_v15, %v1713_v15  ;;  %v1784_v15 = vld [vmem:[%s3748_s4] sm:$0x3] }
 0x174   :  { %v1583_v35 = vadd.f32 %v1582_v16, %v391_v30  ;;  %v1789_v16 = vrot.slane %v1784_v15, %v382_v24  ;;  %v3405_v24 = vld [vmem:[%s3751_s7 + $0x10] sm:$0xff]  }
 0x175   :  { %v1584_v19 = vpop.f32.mrf.mxu1  ;;  %2148 = vmatprep.mubr.bf16.mxu0 %v1717_v17  ;;  %v1793_v17 = vrot.slane %v1784_v15, %v386_v1  ;;  %v3407_v1 = vld [vmem:[%s3751_s7] sm:$0xff]  }
 0x176   :  { %2149 = vmatmul.mubr.bf16.vlgmr.msra.gmra.mxu0 %v1716_v18  ;;  %v1585_v38 = vadd.f32 %v1584_v19, %v395_v32  ;;  %v3408_v32 = vld [vmem:[%s3753_s9 + $0x18] sm:$0xff]  }
 0x177   :  { %v1586_v20 = vpop.f32.mrf.mxu1  ;;  %2899 = vmatpush3.bf16.msra.mxu0 %v3385_v50 }
 0x178   :  { %2900 = vmatprep.subr.bf16.mxu0 %v3386_v51 }
 0x179   :  { %v1587_v21 = vpop.f32.mrf.mxu1 }
 0x17b   :  { %2901 = vmatpush3.bf16.msra.mxu0 %v3387_v57 }
 0x17c   :  { %2902 = vmatprep.subr.bf16.mxu0 %v3388_v59 }
 0x17f   :  { %2903 = vmatpush3.bf16.msra.mxu0 %v3389_v61 }
 0x180   :  { %2904 = vmatprep.subr.bf16.mxu0 %v3390_v10 }
 0x183   :  { %2905 = vmatpush3.bf16.msra.mxu0 %v3391_v62 }
 0x184   :  { %2906 = vmatprep.subr.bf16.mxu0 %v3392_v63 }
 0x187   :  { %2907 = vmatpush3.bf16.msra.mxu0 %v3393_v0 }
 0x188   :  { %2908 = vmatprep.subr.bf16.mxu0 %v3394_v43 }
 0x18b   :  { %2909 = vmatpush3.bf16.msra.mxu0 %v3395_v34 }
 0x18c   :  { %2910 = vmatprep.subr.bf16.mxu0 %v3396_v2 }
 0x18f   :  { %2911 = vmatpush3.bf16.msra.mxu0 %v3397_v3 }
 0x190   :  { %2912 = vmatprep.subr.bf16.mxu0 %v3398_v4 }
 0x193   :  { %2913 = vmatpush3.bf16.msra.mxu0 %v3399_v5 }
 0x194   :  { %2954 = vmatprep.subr.bf16.mxu0 %v3513_v7 }
 0x1aa   :  { %v1623_v22 = vpop.f32.mrf.mxu0 }
 0x1ab   :  { %v1624_v39 = vadd.f32 %v1623_v22, %v1583_v35 }
 0x1ac   :  { %v1625_v23 = vpop.f32.mrf.mxu0 }
 0x1ad   :  { %v1626_v41 = vadd.f32 %v1625_v23, %v1585_v38 }
 0x1ae   :  { %v1627_v27 = vpop.f32.mrf.mxu0 }
 0x1b0   :  { %v1628_v29 = vpop.f32.mrf.mxu0 }
 0x1b3   :  { %v1664_v31 = vpop.f32.mrf.mxu1 }
 0x1b4   :  { %v1665_v42 = vadd.f32 %v1664_v31, %v1624_v39 }
 0x1b5   :  { %v1666_v33 = vpop.f32.mrf.mxu1 }
 0x1b6   :  { %v1667_v45 = vadd.f32 %v1666_v33, %v1626_v41  ;;  %v3409_v33 = vld [vmem:[%s3753_s9 + $0x10] sm:$0xff]  }
 0x1b7   :  { %v1668_v37 = vpop.f32.mrf.mxu1 }
 0x1b8   :  { %v2866_v37 = vld [vmem:[%s3750_s6] ss:$0 sm:$0xff] }
 0x1b9   :  { %v1669_v40 = vpop.f32.mrf.mxu1 }
 0x1bb   :  { %v1705_v44 = vpop.f32.mrf.mxu1 }
 0x1bc   :  { %v1706_v47 = vadd.f32 %v1705_v44, %v1665_v42 }
 0x1bd   :  { %v1707_v48 = vpop.f32.mrf.mxu1 }
 0x1be   :  { %v1708_v52 = vadd.f32 %v1707_v48, %v1667_v45  ;;  %v1714_v54 = vmax.f32 %v1706_v47, 0.0  ;;  %v3410_v47 = vld [vmem:[%s3753_s9 + $0x8] sm:$0xff]   ;;  %v3411_v48 = vld [vmem:[%s3753_s9] sm:$0xff]  }
 0x1bf   :  { %v1709_v55 = vpop.f32.mrf.mxu1 }
 0x1c0   :  { %v1715_v56 = vmax.f32 %v1708_v52, 0.0  ;;  %v1718_v25 = vpack.c.bf16 %v1714_v54, %v1714_v54 }
 0x1c1   :  { %v1710_v58 = vpop.f32.mrf.mxu1 }
 0x1c2   :  { %v1719_v60 = vpack.c.bf16 %v1715_v56, %v1715_v56  ;;  %v2892_v58 = vld [vmem:[%s3754_s10] ss:$0 sm:$0xff] }
 0x1c4   :  { %2189 = vmatprep.mubr.bf16.mxu1 %v1719_v60 }
 0x1c5   :  { %2190 = vmatmul.mubr.bf16.vlgmr.msra.gmra.mxu1 %v1718_v25 }
 0x1c6   :  { %2935 = vmatpush3.bf16.msra.mxu1 %v3400_v6  ;;  %2950 = vmatprep.mubr.msk.bf16.mxu1 %vm3514_vm1, %v3513_v7 }
 0x1c7   :  { %2936 = vmatprep.subr.bf16.mxu1 %v3513_v7 }
 0x1ca   :  { %2937 = vmatpush3.bf16.msra.mxu1 %v3401_v36 }
 0x1cb   :  { %2938 = vmatprep.subr.bf16.mxu1 %v3513_v7 }
 0x1ce   :  { %2939 = vmatpush3.bf16.msra.mxu1 %v3402_v53 }
 0x1cf   :  { %2940 = vmatprep.subr.bf16.mxu1 %v3513_v7 }
 0x1d2   :  { %2941 = vmatpush3.bf16.msra.mxu1 %v3403_v8 }
 0x1d3   :  { %2942 = vmatprep.subr.bf16.mxu1 %v3513_v7 }
 0x1d6   :  { %2943 = vmatpush3.bf16.msra.mxu1 %v3404_v9 }
 0x1d7   :  { %2944 = vmatprep.subr.bf16.mxu1 %v3513_v7 }
 0x1da   :  { %2945 = vmatpush3.bf16.msra.mxu1 %v3405_v24 }
 0x1db   :  { %2946 = vmatprep.subr.bf16.mxu1 %v3513_v7 }
 0x1de   :  { %2947 = vmatpush3.bf16.msra.mxu1 %v3406_v46 }
 0x1df   :  { %2948 = vmatprep.subr.bf16.mxu1 %v3513_v7 }
 0x1e2   :  { %2949 = vmatpush3.bf16.msra.mxu1 %v3407_v1 }
 0x236   :  { %v2150_v11 = vpop.f32.mrf.mxu0 }
 0x237   :  { %v2151_v18 = vadd.f32 %v2150_v11, %v1789_v16 }
 0x238   :  { %v2152_v12 = vpop.f32.mrf.mxu0 }
 0x239   :  { %v2153_v20 = vadd.f32 %v2152_v12, %v1793_v17 }
 0x23a   :  { %v2154_v13 = vpop.f32.mrf.mxu0 }
 0x23c   :  { %v2155_v14 = vpop.f32.mrf.mxu0 }
 0x285   :  { %v2191_v19 = vpop.f32.mrf.mxu1 }
 0x286   :  { %v2192_v21 = vadd.f32 %v2191_v19, %v2151_v18 }
 0x287   :  { %v2193_v22 = vpop.f32.mrf.mxu1 }
 0x288   :  { %v2194_v23 = vadd.f32 %v2193_v22, %v2153_v20  ;;  %v2198_v26 = vmax.f32 %v2192_v21, 0.0 }
 0x289   :  { %v2195_v27 = vpop.f32.mrf.mxu1 }
 0x28a   :  { %v2199_v28 = vmax.f32 %v2194_v23, 0.0  ;;  %v2200_v31 = vpack.c.bf16 %v2198_v26, %v2198_v26 }
 0x28b   :  { %v2196_v29 = vpop.f32.mrf.mxu1 }
 0x28c   :  { %v2201_v30 = vpack.c.bf16 %v2199_v28, %v2199_v28 }
 0x28e   :  { %2369 = vmatprep.mubr.bf16.mxu0 %v2201_v30 }
 0x28f   :  { %2370 = vmatmul.mubr.bf16.vlgmr.msra.gmra.mxu0 %v2200_v31 }
 0x290   :  { %2962 = vmatprep.mubr.msk.bf16.mxu0 %vm3514_vm1, %v3513_v7  ;;  %2955 = vmatpush3.bf16.msra.mxu0 %v3408_v32 }
 0x291   :  { %2956 = vmatprep.subr.bf16.mxu0 %v3513_v7 }
 0x294   :  { %2957 = vmatpush3.bf16.msra.mxu0 %v3409_v33 }
 0x295   :  { %2958 = vmatprep.subr.bf16.mxu0 %v3513_v7 }
 0x298   :  { %2959 = vmatpush3.bf16.msra.mxu0 %v3410_v47 }
 0x299   :  { %2960 = vmatprep.subr.bf16.mxu0 %v3513_v7 }
 0x29c   :  { %2961 = vmatpush3.bf16.msra.mxu0 %v3411_v48 }
 0x34f   :  { %v2914_v35 = vpop.f32.mrf.mxu0 }
 0x351   :  { %v2915_v38 = vpop.f32.mrf.mxu0 }
 0x352   :  { %v2916_v39 = vadd.f32 %v2915_v38, %v2914_v35 }
 0x353   :  { %v2917_v40 = vpop.f32.mrf.mxu0 }
 0x354   :  { %v2372_v41 = vadd.f32 %v2916_v39, %v2866_v37 }
 0x355   :  { %v2918_v42 = vpop.f32.mrf.mxu0 }
 0x356   :  { %v2377_v44 = vmax.f32 %v2372_v41, 0.0 }
 0x358   :  { %v2378_v45 = vpack.c.bf16 %v2377_v44, %v2377_v44 }
 0x35a   :  { %2951 = vmatmul.mubr.bf16.vlgmr.msra.gmra.mxu1 %v2378_v45 }
 0x41a   :  { %v2484_v50 = vpop.f32.mrf.mxu1 }
 0x41b   :  { %v2485_v51 = vadd.f32 %v2883_v49, %v2484_v50 }
 0x41c   :  { %v2952_v52 = vpop.f32.mrf.mxu1 }
 0x41d   :  { %v2490_v54 = vmax.f32 %v2485_v51, 0.0 }
 0x41e   :  { %v2487_v55 = vpop.f32.mrf.mxu1 }
 0x41f   :  { %v2491_v56 = vpack.c.bf16 %v2490_v54, %v2490_v54 }
 0x420   :  { %v2953_v57 = vpop.f32.mrf.mxu1 }
 0x421   :  { %2963 = vmatmul.mubr.msk.bf16.vlgmr.msra.gmra.mxu0 %vm2531_vm2, %v2491_v56 }
 0x4e1   :  { %v2569_v59 = vpop.f32.mrf.mxu0 }
 0x4e2   :  { %v2570_v60 = vadd.f32 %v2892_v58, %v2569_v59 }
 0x4e3   :  { %v2964_v25 = vpop.f32.mrf.mxu0 }
 0x4e4   :  { %2575 = vmax.xlane.f32.xlu0 %v2570_v60 }
 0x4e5   :  { %v2572_v61 = vpop.f32.mrf.mxu0 }
 0x4e7   :  { %v2965_v10 = vpop.f32.mrf.mxu0 }
 0x56d   :  { %v2576_v62 = vpop.xlane.xlu0 %2575 }
 0x56e   :  { %v2577_v63 = vsub.f32 %v2570_v60, %v2576_v62 }
 0x570   :  { %v2578_v0 = vmul.f32 1.442695, %v2577_v63 }
 0x572   :  { %3412 = vpow2.f32 %v2578_v0 }
 0x57f   :  { %v3413_v43 = vpop.eup %3412 }
 0x580   :  { %2580 = vadd.xlane.f32.xlu0 %v3413_v43 }
 0x609   :  { %v2581_v34 = vpop.xlane.xlu0 %2580 }
 0x60a   :  { %3414 = vlog2.f32 %v2581_v34 }
 0x617   :  { %v3415_v2 = vpop.eup %3414 }
 0x618   :  { %v2583_v3 = vmul.f32 0.6931472, %v3415_v2 }
 0x61a   :  { %v2584_v4 = vsub.f32 %v2577_v63, %v2583_v3 }
 0x61c   :  { %2585 = vst [vmem:[#allocation8] sm:$0xff] %v2584_v4 }
 0x61d   :  { %2590 = vsyncadd [#allocation4], 96  ;;  %s3515_s8 = smov [#allocation8]  }
 0x61e   :  { %s2591_s9 = sshll.u32 %s3515_s8, 4  ;;  %s2592_s9 = int_to_ptr.vmem [resolvable:$true] %s2591_s9 }
 0x61f   :  { %s3476_s10 = scalar_lea.vmem %s2592_s9, 32  ;;  %s3480_s17 = scalar_lea.vmem %s2592_s9, 128 }
 0x620   :  { %p3477_p1 = scmp.ne.s32.totalorder %s2592_s9, %s3476_s10  ;;  %p3481_p2 = scmp.lt.s32.totalorder %s2592_s9, %s2592_s9 }
 0x621   :  { %p3482_p3 = scmp.lt.s32.totalorder %s3480_s17, %s3476_s10 }
 0x623   :  { %p3483_p4 = por %p3482_p3, %p3481_p2 }
 0x625   :  { %p3484_p5 = pnand %p3483_p4, %p3477_p1 }
 0x627   :  { %3487 = shalt.err (!%p3484_p5)
}
 0x628   :  { %s3516_s1 = smov 32   ;;  %s3517_s5 = smov 2  }
 0x629   :  { %2597 = dma.vmem_to_hbm [thread:$0]  %s2592_s9, 32, %s3755_s11, [#allocation4], %s3516_s1, %s3516_s1, %s3517_s5  }
 0x62a   :  { %3500 = dma.done.wait [#allocation4], 128  }
 0x62b   :  { %3501 = vsyncadd [#allocation4], 4294967168 }
 0x62c   :  { %2601 = vsyncpa [#allocation3], 1 }
 0x62d   :  { %2602 = vsyncpa [#allocation6], 1 }
 0x62e   :  { %2603 = vsyncpa [#allocation4], 1 }

</bundles_post_ra>
